<compile_context>
chip_gen: v7x
topology: tpu7x:2x2x1
jax: 0.10.0
libtpu: 0.0.40
codegen_flags: <defaults>
</compile_context>

<pallas_src>
import jax
import jax.numpy as jnp
from jax.experimental import pallas as pl
from jax.experimental.pallas import tpu as pltpu

_LANE = 128          # pad channel / contraction dims to this (lane width)
_NEG_SLOPE = 0.2
_BN_EPS = 1e-5


# ---------------------------------------------------------------------------
# small helpers
# ---------------------------------------------------------------------------
def _round_up(x, m):
    return ((x + m - 1) // m) * m


def _pad_to(x, axis, target):
    pad = target - x.shape[axis]
    if pad <= 0:
        return x
    widths = [(0, 0)] * x.ndim
    widths[axis] = (0, pad)
    return jnp.pad(x, widths)


# ---------------------------------------------------------------------------
# fused Pallas kernel
# ---------------------------------------------------------------------------
def _bn_lrelu(y, gamma, beta, m_rows, *, eps, slope):
    """Training-mode BatchNorm2d over the N*Ho*Wo rows, folded to one per-channel
    scale/shift (single pass: E[y], E[y^2]), followed by LeakyReLU."""
    inv_m = 1.0 / float(m_rows)
    mean = jnp.sum(y, axis=0, keepdims=True) * inv_m
    mean_sq = jnp.sum(y * y, axis=0, keepdims=True) * inv_m
    var = mean_sq - mean * mean                    # biased variance (PyTorch train mode)
    scale = gamma * jax.lax.rsqrt(var + eps)       # rsqrt -> EUP slot (≈ free)
    shift = beta - mean * scale
    yn = y * scale + shift                         # single multiply-add epilogue
    return jnp.where(yn >= 0, yn, slope * yn)      # LeakyReLU(slope)


def _make_fused_kernel(meta, *, slope, eps):
    """meta: tuple of per-layer dicts {m, kk, cp, final}.
    Kernel argument order (then the output ref):
      layer 0         : patches, weight
      layers 1..L-1   : selectors (kk, m_i, m_{i-1}), weights (kk, cp_prev, cp)
      per non-final   : gamma, beta
      final layer     : bias
    """

    def kernel(*refs):
        out_ref = refs[-1]
        refs = refs[:-1]
        pos = 0
        act = None                                 # previous activation, bf16, lives in VMEM/vregs
        for layer in meta:
            if layer["kk"] == 0:
                # first layer: conv as one matmul over wrapper-side im2col patches
                p_ref, w_ref = refs[pos], refs[pos + 1]
                pos += 2
                y = jnp.dot(p_ref[...], w_ref[...],
                            preferred_element_type=jnp.float32)
            else:
                # conv = sum over k*k taps of (one-hot row gather) @ (per-tap weight);
                # both factors are MXU matmuls, no reshapes / HBM traffic.
                sel_ref, w_ref = refs[pos], refs[pos + 1]
                pos += 2
                y = None
                for t in range(layer["kk"]):       # static unroll over taps
                    g = jnp.dot(sel_ref[t], act,
                                preferred_element_type=jnp.float32)
                    term = jnp.dot(g.astype(jnp.bfloat16), w_ref[t],
                                   preferred_element_type=jnp.float32)
                    y = term if y is None else y + term

            if layer["final"]:
                b_ref = refs[pos]
                pos += 1
                out_ref[...] = y + b_ref[...]      # lane-dense (m, 128) f32 store
            else:
                g_ref, be_ref = refs[pos], refs[pos + 1]
                pos += 2
                # conv bias intentionally omitted: BN's mean subtraction cancels it.
                a = _bn_lrelu(y, g_ref[...], be_ref[...], layer["m"],
                              eps=eps, slope=slope)
                act = a.astype(jnp.bfloat16)       # bf16 operand for next MXU matmul

    return kernel


# ---------------------------------------------------------------------------
# wrapper-side glue: im2col (first layer only), tap selectors/weights,
# spectral norm, parameter init
# ---------------------------------------------------------------------------
def _im2col_nchw(x, k, s):
    """x: (N, C, H, W) -> patches (N*Ho*Wo, C*k*k), K ordered (C, kh, kw)."""
    N, C, H, W = x.shape
    Ho = (H - k) // s + 1
    Wo = (W - k) // s + 1
    cols = []
    for kh in range(k):
        for kw in range(k):
            cols.append(x[:, :, kh:kh + s * Ho:s, kw:kw + s * Wo:s])  # (N,C,Ho,Wo)
    p = jnp.stack(cols, axis=-1)                   # (N, C, Ho, Wo, k*k)
    p = jnp.transpose(p, (0, 2, 3, 1, 4))          # (N, Ho, Wo, C, k*k)
    return p.reshape(N * Ho * Wo, C * k * k)


def _tap_selectors(n, hi, wi, ho, wo, k, s):
    """sel[t, m_out, m_in] = 1 iff activation row m_in feeds tap t=(kh,kw) of
    output row m_out (rows ordered (n, h, w)).  0/1 values are exact in bf16."""
    m_in = n * hi * wi
    nn = jnp.arange(n)[:, None, None]
    hh = jnp.arange(ho)[None, :, None]
    ww = jnp.arange(wo)[None, None, :]
    taps = []
    for kh in range(k):
        for kw in range(k):
            rows = (nn * hi + hh * s + kh) * wi + (ww * s + kw)
            taps.append(jax.nn.one_hot(rows.reshape(-1), m_in, dtype=jnp.bfloat16))
    return jnp.stack(taps, axis=0)                 # (k*k, n*ho*wo, n*hi*wi)


def _tap_weights(w_sn, cin_pad, cout_pad):
    """(Cout, Cin, k, k) -> (k*k, cin_pad, cout_pad), zero padded, bf16."""
    cout, cin, k, _ = w_sn.shape
    wt = jnp.transpose(w_sn, (2, 3, 1, 0)).reshape(k * k, cin, cout)
    wt = _pad_to(_pad_to(wt, 1, cin_pad), 2, cout_pad)
    return wt.astype(jnp.bfloat16)


def _spectral_normalize(w, u, n_iters=1, eps=1e-12):
    """PyTorch-style spectral norm: W / sigma_max via power iteration.
    Stateless: the persistent `u` buffer is NOT updated in place (PyTorch does),
    and eps is added (torch clamps with max(norm, eps)) — forward-only glue."""
    cout = w.shape[0]
    w_mat = w.reshape(cout, -1)
    v = None
    for _ in range(n_iters):
        v = w_mat.T @ u
        v = v / (jnp.linalg.norm(v) + eps)
        u = w_mat @ v
        u = u / (jnp.linalg.norm(u) + eps)
    sigma = u @ (w_mat @ v)
    return w / sigma


def init_params(key, num_channels, kernel_sizes):
    params = []
    for i in range(len(num_channels) - 1):
        cin, cout, k = num_channels[i], num_channels[i + 1], kernel_sizes[i]
        key, kw, kb, ku = jax.random.split(key, 4)
        fan_in = cin * k * k
        bound = 1.0 / float(fan_in) ** 0.5         # PyTorch Conv2d default init range
        w = jax.random.uniform(kw, (cout, cin, k, k), jnp.float32, -bound, bound)
        b = jax.random.uniform(kb, (cout,), jnp.float32, -bound, bound)
        u = jax.random.normal(ku, (cout,), jnp.float32)
        u = u / (jnp.linalg.norm(u) + 1e-12)       # spectral-norm power-iteration vector
        gamma = jnp.ones((cout,), jnp.float32)     # BatchNorm2d affine defaults
        beta = jnp.zeros((cout,), jnp.float32)
        params.append(dict(w=w, b=b, u=u, gamma=gamma, beta=beta))
    return params


# ---------------------------------------------------------------------------
# Discriminator forward (single fused pallas_call)
# ---------------------------------------------------------------------------
def discriminator_forward(x, params, kernel_sizes, strides):
    n, _, h, w = x.shape
    n_layers = len(params)

    args, meta = [], []
    cp_prev = None
    for i in range(n_layers):
        k, s = kernel_sizes[i], strides[i]
        cout = params[i]["w"].shape[0]
        cp = _round_up(cout, _LANE)
        w_sn = _spectral_normalize(params[i]["w"], params[i]["u"])
        ho, wo = (h - k) // s + 1, (w - k) // s + 1
        m = n * ho * wo
        final = i == n_layers - 1

        if i == 0:
            patches = _im2col_nchw(x, k, s)
            kdim = patches.shape[1]
            kp = _round_up(kdim, _LANE)
            args += [
                _pad_to(patches, 1, kp).astype(jnp.bfloat16),
                _pad_to(_pad_to(w_sn.reshape(cout, kdim).T, 0, kp), 1, cp)
                .astype(jnp.bfloat16),
            ]
            kk = 0
        else:
            kk = k * k
            args += [_tap_selectors(n, h, w, ho, wo, k, s),
                     _tap_weights(w_sn, cp_prev, cp)]

        if final:
            args.append(_pad_to(params[i]["b"].astype(jnp.float32)[None, :], 1, cp))
        else:
            args += [
                _pad_to(params[i]["gamma"].astype(jnp.float32)[None, :], 1, cp),
                _pad_to(params[i]["beta"].astype(jnp.float32)[None, :], 1, cp),
            ]

        meta.append(dict(m=m, kk=kk, cp=cp, final=final))
        h, w = ho, wo
        cp_prev = cp

    kernel = _make_fused_kernel(tuple(meta), slope=_NEG_SLOPE, eps=_BN_EPS)

    # Advisory cost hints for XLA scheduling around the custom call.
    flops = 0
    mp = cpp = None
    for j, mt in enumerate(meta):
        if mt["kk"] == 0:
            flops += 2 * mt["m"] * args[0].shape[1] * mt["cp"]
        else:
            flops += mt["kk"] * (2 * mt["m"] * mp * cpp + 2 * mt["m"] * cpp * mt["cp"])
        mp, cpp = mt["m"], mt["cp"]
    transcendentals = sum(mt["cp"] for mt in meta if not mt["final"])
    bytes_accessed = sum(int(a.size) * a.dtype.itemsize for a in args)
    bytes_accessed += meta[-1]["m"] * meta[-1]["cp"] * 4

    vmem = pl.BlockSpec(memory_space=pltpu.MemorySpace.VMEM)
    out = pl.pallas_call(
        kernel,
        out_shape=jax.ShapeDtypeStruct((meta[-1]["m"], meta[-1]["cp"]), jnp.float32),
        in_specs=[vmem] * len(args),
        out_specs=vmem,
        compiler_params=pltpu.CompilerParams(vmem_limit_bytes=32 * 1024 * 1024),
        cost_estimate=pl.CostEstimate(flops=int(flops),
                                      transcendentals=int(transcendentals),
                                      bytes_accessed=int(bytes_accessed)),
    )(*args)

    # Slice off the channel padding and restore PyTorch's NCHW flatten order.
    cout_final = params[-1]["w"].shape[0]
    out = out[:, :cout_final].reshape(n, h, w, cout_final)
    out = jnp.transpose(out, (0, 3, 1, 2))
    return out.reshape(n, -1)                      # pred.view(len(pred), -1)


# TODO(synk): get_loss / criterion is training-time BCE glue over two forwards;
# it is not part of the forward pass and is intentionally not implemented.


if __name__ == "__main__":
    # Small DCGAN-like config: channels [4, 8, 16, 1], kernels [3, 3, 2],
    # strides [2, 2, 1]; input image (N=2, C=4, H=16, W=16).
    num_channels = [4, 8, 16, 1]
    kernel_sizes = [3, 3, 2]
    strides = [2, 2, 1]

    key = jax.random.PRNGKey(0)
    key, kx = jax.random.split(key)
    x = jax.random.normal(kx, (2, 4, 16, 16), jnp.float32)

    params = init_params(key, num_channels, kernel_sizes)

    out = discriminator_forward(x, params, kernel_sizes, strides)
    out = jax.block_until_ready(out)

    # Final spatial map is (1, 2, 2) -> flattened prediction of shape (2, 4).
    assert out.shape == (2, 4), out.shape
    print("KERNEL_OK")
</pallas_src>

<mosaic_0001>
module attributes {stable_mosaic.version = 11 : i64} {
  func.func @kernel(%arg0: memref<98x128xbf16, #tpu.memory_space<vmem>>, %arg1: memref<128x128xbf16, #tpu.memory_space<vmem>>, %arg2: memref<1x128xf32, #tpu.memory_space<vmem>>, %arg3: memref<1x128xf32, #tpu.memory_space<vmem>>, %arg4: memref<9x18x98xbf16, #tpu.memory_space<vmem>>, %arg5: memref<9x128x128xbf16, #tpu.memory_space<vmem>>, %arg6: memref<1x128xf32, #tpu.memory_space<vmem>>, %arg7: memref<1x128xf32, #tpu.memory_space<vmem>>, %arg8: memref<4x8x18xbf16, #tpu.memory_space<vmem>>, %arg9: memref<4x128x128xbf16, #tpu.memory_space<vmem>>, %arg10: memref<1x128xf32, #tpu.memory_space<vmem>>, %arg11: memref<8x128xf32, #tpu.memory_space<vmem>>) attributes {dimension_semantics = [], scalar_prefetch = 0 : i64, scratch_operands = 0 : i64, tpu.core_type = #tpu.core_type<tc>} {
    %c0 = arith.constant 0 : index
    %c0_0 = arith.constant 0 : index
    %0 = vector.load %arg0[%c0, %c0_0] : memref<98x128xbf16, #tpu.memory_space<vmem>>, vector<98x128xbf16>
    %c0_1 = arith.constant 0 : index
    %c0_2 = arith.constant 0 : index
    %1 = vector.load %arg1[%c0_1, %c0_2] : memref<128x128xbf16, #tpu.memory_space<vmem>>, vector<128x128xbf16>
    %cst = arith.constant dense<0.000000e+00> : vector<98x128xf32>
    %2 = tpu.matmul %0, %1, %cst {dimension_numbers = #tpu.dot_dimension_numbers<[1], [0], [0], [1], [0, 0, 1, 1], [], []>} : vector<98x128xbf16>, vector<128x128xbf16>, vector<98x128xf32> -> vector<98x128xf32>
    %c0_3 = arith.constant 0 : index
    %c0_4 = arith.constant 0 : index
    %3 = vector.load %arg2[%c0_3, %c0_4] : memref<1x128xf32, #tpu.memory_space<vmem>>, vector<1x128xf32>
    %c0_5 = arith.constant 0 : index
    %c0_6 = arith.constant 0 : index
    %4 = vector.load %arg3[%c0_5, %c0_6] : memref<1x128xf32, #tpu.memory_space<vmem>>, vector<1x128xf32>
    %cst_7 = arith.constant dense<0.000000e+00> : vector<128xf32>
    %5 = vector.multi_reduction <add>, %2, %cst_7 [0] : vector<98x128xf32> to vector<128xf32>
    %6 = vector.shape_cast %5 : vector<128xf32> to vector<1x128xf32>
    %cst_8 = arith.constant 0.0102040814 : f32
    %7 = vector.broadcast %cst_8 : f32 to vector<1x128xf32>
    %8 = arith.mulf %6, %7 : vector<1x128xf32>
    %9 = arith.mulf %2, %2 : vector<98x128xf32>
    %cst_9 = arith.constant dense<0.000000e+00> : vector<128xf32>
    %10 = vector.multi_reduction <add>, %9, %cst_9 [0] : vector<98x128xf32> to vector<128xf32>
    %11 = vector.shape_cast %10 : vector<128xf32> to vector<1x128xf32>
    %cst_10 = arith.constant 0.0102040814 : f32
    %12 = vector.broadcast %cst_10 : f32 to vector<1x128xf32>
    %13 = arith.mulf %11, %12 : vector<1x128xf32>
    %14 = arith.mulf %8, %8 : vector<1x128xf32>
    %15 = arith.subf %13, %14 : vector<1x128xf32>
    %cst_11 = arith.constant 9.99999974E-6 : f32
    %16 = vector.broadcast %cst_11 : f32 to vector<1x128xf32>
    %17 = arith.addf %15, %16 : vector<1x128xf32>
    %18 = math.rsqrt %17 : vector<1x128xf32>
    %19 = arith.mulf %3, %18 : vector<1x128xf32>
    %20 = arith.mulf %8, %19 : vector<1x128xf32>
    %21 = arith.subf %4, %20 : vector<1x128xf32>
    %22 = vector.broadcast %19 : vector<1x128xf32> to vector<98x128xf32>
    %23 = arith.mulf %2, %22 : vector<98x128xf32>
    %24 = vector.broadcast %21 : vector<1x128xf32> to vector<98x128xf32>
    %25 = arith.addf %23, %24 : vector<98x128xf32>
    %cst_12 = arith.constant 0.000000e+00 : f32
    %26 = vector.broadcast %cst_12 : f32 to vector<98x128xf32>
    %27 = arith.cmpf oge, %25, %26 : vector<98x128xf32>
    %cst_13 = arith.constant 2.000000e-01 : f32
    %28 = vector.broadcast %cst_13 : f32 to vector<98x128xf32>
    %29 = arith.mulf %28, %25 : vector<98x128xf32>
    %30 = arith.select %27, %25, %29 : vector<98x128xi1>, vector<98x128xf32>
    %31 = arith.truncf %30 : vector<98x128xf32> to vector<98x128xbf16>
    %c0_14 = arith.constant 0 : index
    %c0_15 = arith.constant 0 : index
    %c0_16 = arith.constant 0 : index
    %32 = vector.load %arg4[%c0_14, %c0_15, %c0_16] : memref<9x18x98xbf16, #tpu.memory_space<vmem>>, vector<1x18x98xbf16>
    %33 = vector.shape_cast %32 : vector<1x18x98xbf16> to vector<18x98xbf16>
    %cst_17 = arith.constant dense<0.000000e+00> : vector<18x128xf32>
    %34 = tpu.matmul %33, %31, %cst_17 {dimension_numbers = #tpu.dot_dimension_numbers<[1], [0], [0], [1], [0, 0, 1, 1], [], []>} : vector<18x98xbf16>, vector<98x128xbf16>, vector<18x128xf32> -> vector<18x128xf32>
    %35 = arith.truncf %34 : vector<18x128xf32> to vector<18x128xbf16>
    %c0_18 = arith.constant 0 : index
    %c0_19 = arith.constant 0 : index
    %c0_20 = arith.constant 0 : index
    %36 = vector.load %arg5[%c0_18, %c0_19, %c0_20] : memref<9x128x128xbf16, #tpu.memory_space<vmem>>, vector<1x128x128xbf16>
    %37 = vector.shape_cast %36 : vector<1x128x128xbf16> to vector<128x128xbf16>
    %cst_21 = arith.constant dense<0.000000e+00> : vector<18x128xf32>
    %38 = tpu.matmul %35, %37, %cst_21 {dimension_numbers = #tpu.dot_dimension_numbers<[1], [0], [0], [1], [0, 0, 1, 1], [], []>} : vector<18x128xbf16>, vector<128x128xbf16>, vector<18x128xf32> -> vector<18x128xf32>
    %c1 = arith.constant 1 : index
    %c0_22 = arith.constant 0 : index
    %c0_23 = arith.constant 0 : index
    %39 = vector.load %arg4[%c1, %c0_22, %c0_23] : memref<9x18x98xbf16, #tpu.memory_space<vmem>>, vector<1x18x98xbf16>
    %40 = vector.shape_cast %39 : vector<1x18x98xbf16> to vector<18x98xbf16>
    %cst_24 = arith.constant dense<0.000000e+00> : vector<18x128xf32>
    %41 = tpu.matmul %40, %31, %cst_24 {dimension_numbers = #tpu.dot_dimension_numbers<[1], [0], [0], [1], [0, 0, 1, 1], [], []>} : vector<18x98xbf16>, vector<98x128xbf16>, vector<18x128xf32> -> vector<18x128xf32>
    %42 = arith.truncf %41 : vector<18x128xf32> to vector<18x128xbf16>
    %c1_25 = arith.constant 1 : index
    %c0_26 = arith.constant 0 : index
    %c0_27 = arith.constant 0 : index
    %43 = vector.load %arg5[%c1_25, %c0_26, %c0_27] : memref<9x128x128xbf16, #tpu.memory_space<vmem>>, vector<1x128x128xbf16>
    %44 = vector.shape_cast %43 : vector<1x128x128xbf16> to vector<128x128xbf16>
    %cst_28 = arith.constant dense<0.000000e+00> : vector<18x128xf32>
    %45 = tpu.matmul %42, %44, %cst_28 {dimension_numbers = #tpu.dot_dimension_numbers<[1], [0], [0], [1], [0, 0, 1, 1], [], []>} : vector<18x128xbf16>, vector<128x128xbf16>, vector<18x128xf32> -> vector<18x128xf32>
    %46 = arith.addf %38, %45 : vector<18x128xf32>
    %c2 = arith.constant 2 : index
    %c0_29 = arith.constant 0 : index
    %c0_30 = arith.constant 0 : index
    %47 = vector.load %arg4[%c2, %c0_29, %c0_30] : memref<9x18x98xbf16, #tpu.memory_space<vmem>>, vector<1x18x98xbf16>
    %48 = vector.shape_cast %47 : vector<1x18x98xbf16> to vector<18x98xbf16>
    %cst_31 = arith.constant dense<0.000000e+00> : vector<18x128xf32>
    %49 = tpu.matmul %48, %31, %cst_31 {dimension_numbers = #tpu.dot_dimension_numbers<[1], [0], [0], [1], [0, 0, 1, 1], [], []>} : vector<18x98xbf16>, vector<98x128xbf16>, vector<18x128xf32> -> vector<18x128xf32>
    %50 = arith.truncf %49 : vector<18x128xf32> to vector<18x128xbf16>
    %c2_32 = arith.constant 2 : index
    %c0_33 = arith.constant 0 : index
    %c0_34 = arith.constant 0 : index
    %51 = vector.load %arg5[%c2_32, %c0_33, %c0_34] : memref<9x128x128xbf16, #tpu.memory_space<vmem>>, vector<1x128x128xbf16>
    %52 = vector.shape_cast %51 : vector<1x128x128xbf16> to vector<128x128xbf16>
    %cst_35 = arith.constant dense<0.000000e+00> : vector<18x128xf32>
    %53 = tpu.matmul %50, %52, %cst_35 {dimension_numbers = #tpu.dot_dimension_numbers<[1], [0], [0], [1], [0, 0, 1, 1], [], []>} : vector<18x128xbf16>, vector<128x128xbf16>, vector<18x128xf32> -> vector<18x128xf32>
    %54 = arith.addf %46, %53 : vector<18x128xf32>
    %c3 = arith.constant 3 : index
    %c0_36 = arith.constant 0 : index
    %c0_37 = arith.constant 0 : index
    %55 = vector.load %arg4[%c3, %c0_36, %c0_37] : memref<9x18x98xbf16, #tpu.memory_space<vmem>>, vector<1x18x98xbf16>
    %56 = vector.shape_cast %55 : vector<1x18x98xbf16> to vector<18x98xbf16>
    %cst_38 = arith.constant dense<0.000000e+00> : vector<18x128xf32>
    %57 = tpu.matmul %56, %31, %cst_38 {dimension_numbers = #tpu.dot_dimension_numbers<[1], [0], [0], [1], [0, 0, 1, 1], [], []>} : vector<18x98xbf16>, vector<98x128xbf16>, vector<18x128xf32> -> vector<18x128xf32>
    %58 = arith.truncf %57 : vector<18x128xf32> to vector<18x128xbf16>
    %c3_39 = arith.constant 3 : index
    %c0_40 = arith.constant 0 : index
    %c0_41 = arith.constant 0 : index
    %59 = vector.load %arg5[%c3_39, %c0_40, %c0_41] : memref<9x128x128xbf16, #tpu.memory_space<vmem>>, vector<1x128x128xbf16>
    %60 = vector.shape_cast %59 : vector<1x128x128xbf16> to vector<128x128xbf16>
    %cst_42 = arith.constant dense<0.000000e+00> : vector<18x128xf32>
    %61 = tpu.matmul %58, %60, %cst_42 {dimension_numbers = #tpu.dot_dimension_numbers<[1], [0], [0], [1], [0, 0, 1, 1], [], []>} : vector<18x128xbf16>, vector<128x128xbf16>, vector<18x128xf32> -> vector<18x128xf32>
    %62 = arith.addf %54, %61 : vector<18x128xf32>
    %c4 = arith.constant 4 : index
    %c0_43 = arith.constant 0 : index
    %c0_44 = arith.constant 0 : index
    %63 = vector.load %arg4[%c4, %c0_43, %c0_44] : memref<9x18x98xbf16, #tpu.memory_space<vmem>>, vector<1x18x98xbf16>
    %64 = vector.shape_cast %63 : vector<1x18x98xbf16> to vector<18x98xbf16>
    %cst_45 = arith.constant dense<0.000000e+00> : vector<18x128xf32>
    %65 = tpu.matmul %64, %31, %cst_45 {dimension_numbers = #tpu.dot_dimension_numbers<[1], [0], [0], [1], [0, 0, 1, 1], [], []>} : vector<18x98xbf16>, vector<98x128xbf16>, vector<18x128xf32> -> vector<18x128xf32>
    %66 = arith.truncf %65 : vector<18x128xf32> to vector<18x128xbf16>
    %c4_46 = arith.constant 4 : index
    %c0_47 = arith.constant 0 : index
    %c0_48 = arith.constant 0 : index
    %67 = vector.load %arg5[%c4_46, %c0_47, %c0_48] : memref<9x128x128xbf16, #tpu.memory_space<vmem>>, vector<1x128x128xbf16>
    %68 = vector.shape_cast %67 : vector<1x128x128xbf16> to vector<128x128xbf16>
    %cst_49 = arith.constant dense<0.000000e+00> : vector<18x128xf32>
    %69 = tpu.matmul %66, %68, %cst_49 {dimension_numbers = #tpu.dot_dimension_numbers<[1], [0], [0], [1], [0, 0, 1, 1], [], []>} : vector<18x128xbf16>, vector<128x128xbf16>, vector<18x128xf32> -> vector<18x128xf32>
    %70 = arith.addf %62, %69 : vector<18x128xf32>
    %c5 = arith.constant 5 : index
    %c0_50 = arith.constant 0 : index
    %c0_51 = arith.constant 0 : index
    %71 = vector.load %arg4[%c5, %c0_50, %c0_51] : memref<9x18x98xbf16, #tpu.memory_space<vmem>>, vector<1x18x98xbf16>
    %72 = vector.shape_cast %71 : vector<1x18x98xbf16> to vector<18x98xbf16>
    %cst_52 = arith.constant dense<0.000000e+00> : vector<18x128xf32>
    %73 = tpu.matmul %72, %31, %cst_52 {dimension_numbers = #tpu.dot_dimension_numbers<[1], [0], [0], [1], [0, 0, 1, 1], [], []>} : vector<18x98xbf16>, vector<98x128xbf16>, vector<18x128xf32> -> vector<18x128xf32>
    %74 = arith.truncf %73 : vector<18x128xf32> to vector<18x128xbf16>
    %c5_53 = arith.constant 5 : index
    %c0_54 = arith.constant 0 : index
    %c0_55 = arith.constant 0 : index
    %75 = vector.load %arg5[%c5_53, %c0_54, %c0_55] : memref<9x128x128xbf16, #tpu.memory_space<vmem>>, vector<1x128x128xbf16>
    %76 = vector.shape_cast %75 : vector<1x128x128xbf16> to vector<128x128xbf16>
    %cst_56 = arith.constant dense<0.000000e+00> : vector<18x128xf32>
    %77 = tpu.matmul %74, %76, %cst_56 {dimension_numbers = #tpu.dot_dimension_numbers<[1], [0], [0], [1], [0, 0, 1, 1], [], []>} : vector<18x128xbf16>, vector<128x128xbf16>, vector<18x128xf32> -> vector<18x128xf32>
    %78 = arith.addf %70, %77 : vector<18x128xf32>
    %c6 = arith.constant 6 : index
    %c0_57 = arith.constant 0 : index
    %c0_58 = arith.constant 0 : index
    %79 = vector.load %arg4[%c6, %c0_57, %c0_58] : memref<9x18x98xbf16, #tpu.memory_space<vmem>>, vector<1x18x98xbf16>
    %80 = vector.shape_cast %79 : vector<1x18x98xbf16> to vector<18x98xbf16>
    %cst_59 = arith.constant dense<0.000000e+00> : vector<18x128xf32>
    %81 = tpu.matmul %80, %31, %cst_59 {dimension_numbers = #tpu.dot_dimension_numbers<[1], [0], [0], [1], [0, 0, 1, 1], [], []>} : vector<18x98xbf16>, vector<98x128xbf16>, vector<18x128xf32> -> vector<18x128xf32>
    %82 = arith.truncf %81 : vector<18x128xf32> to vector<18x128xbf16>
    %c6_60 = arith.constant 6 : index
    %c0_61 = arith.constant 0 : index
    %c0_62 = arith.constant 0 : index
    %83 = vector.load %arg5[%c6_60, %c0_61, %c0_62] : memref<9x128x128xbf16, #tpu.memory_space<vmem>>, vector<1x128x128xbf16>
    %84 = vector.shape_cast %83 : vector<1x128x128xbf16> to vector<128x128xbf16>
    %cst_63 = arith.constant dense<0.000000e+00> : vector<18x128xf32>
    %85 = tpu.matmul %82, %84, %cst_63 {dimension_numbers = #tpu.dot_dimension_numbers<[1], [0], [0], [1], [0, 0, 1, 1], [], []>} : vector<18x128xbf16>, vector<128x128xbf16>, vector<18x128xf32> -> vector<18x128xf32>
    %86 = arith.addf %78, %85 : vector<18x128xf32>
    %c7 = arith.constant 7 : index
    %c0_64 = arith.constant 0 : index
    %c0_65 = arith.constant 0 : index
    %87 = vector.load %arg4[%c7, %c0_64, %c0_65] : memref<9x18x98xbf16, #tpu.memory_space<vmem>>, vector<1x18x98xbf16>
    %88 = vector.shape_cast %87 : vector<1x18x98xbf16> to vector<18x98xbf16>
    %cst_66 = arith.constant dense<0.000000e+00> : vector<18x128xf32>
    %89 = tpu.matmul %88, %31, %cst_66 {dimension_numbers = #tpu.dot_dimension_numbers<[1], [0], [0], [1], [0, 0, 1, 1], [], []>} : vector<18x98xbf16>, vector<98x128xbf16>, vector<18x128xf32> -> vector<18x128xf32>
    %90 = arith.truncf %89 : vector<18x128xf32> to vector<18x128xbf16>
    %c7_67 = arith.constant 7 : index
    %c0_68 = arith.constant 0 : index
    %c0_69 = arith.constant 0 : index
    %91 = vector.load %arg5[%c7_67, %c0_68, %c0_69] : memref<9x128x128xbf16, #tpu.memory_space<vmem>>, vector<1x128x128xbf16>
    %92 = vector.shape_cast %91 : vector<1x128x128xbf16> to vector<128x128xbf16>
    %cst_70 = arith.constant dense<0.000000e+00> : vector<18x128xf32>
    %93 = tpu.matmul %90, %92, %cst_70 {dimension_numbers = #tpu.dot_dimension_numbers<[1], [0], [0], [1], [0, 0, 1, 1], [], []>} : vector<18x128xbf16>, vector<128x128xbf16>, vector<18x128xf32> -> vector<18x128xf32>
    %94 = arith.addf %86, %93 : vector<18x128xf32>
    %c8 = arith.constant 8 : index
    %c0_71 = arith.constant 0 : index
    %c0_72 = arith.constant 0 : index
    %95 = vector.load %arg4[%c8, %c0_71, %c0_72] : memref<9x18x98xbf16, #tpu.memory_space<vmem>>, vector<1x18x98xbf16>
    %96 = vector.shape_cast %95 : vector<1x18x98xbf16> to vector<18x98xbf16>
    %cst_73 = arith.constant dense<0.000000e+00> : vector<18x128xf32>
    %97 = tpu.matmul %96, %31, %cst_73 {dimension_numbers = #tpu.dot_dimension_numbers<[1], [0], [0], [1], [0, 0, 1, 1], [], []>} : vector<18x98xbf16>, vector<98x128xbf16>, vector<18x128xf32> -> vector<18x128xf32>
    %98 = arith.truncf %97 : vector<18x128xf32> to vector<18x128xbf16>
    %c8_74 = arith.constant 8 : index
    %c0_75 = arith.constant 0 : index
    %c0_76 = arith.constant 0 : index
    %99 = vector.load %arg5[%c8_74, %c0_75, %c0_76] : memref<9x128x128xbf16, #tpu.memory_space<vmem>>, vector<1x128x128xbf16>
    %100 = vector.shape_cast %99 : vector<1x128x128xbf16> to vector<128x128xbf16>
    %cst_77 = arith.constant dense<0.000000e+00> : vector<18x128xf32>
    %101 = tpu.matmul %98, %100, %cst_77 {dimension_numbers = #tpu.dot_dimension_numbers<[1], [0], [0], [1], [0, 0, 1, 1], [], []>} : vector<18x128xbf16>, vector<128x128xbf16>, vector<18x128xf32> -> vector<18x128xf32>
    %102 = arith.addf %94, %101 : vector<18x128xf32>
    %c0_78 = arith.constant 0 : index
    %c0_79 = arith.constant 0 : index
    %103 = vector.load %arg6[%c0_78, %c0_79] : memref<1x128xf32, #tpu.memory_space<vmem>>, vector<1x128xf32>
    %c0_80 = arith.constant 0 : index
    %c0_81 = arith.constant 0 : index
    %104 = vector.load %arg7[%c0_80, %c0_81] : memref<1x128xf32, #tpu.memory_space<vmem>>, vector<1x128xf32>
    %cst_82 = arith.constant dense<0.000000e+00> : vector<128xf32>
    %105 = vector.multi_reduction <add>, %102, %cst_82 [0] : vector<18x128xf32> to vector<128xf32>
    %106 = vector.shape_cast %105 : vector<128xf32> to vector<1x128xf32>
    %cst_83 = arith.constant 0.055555556 : f32
    %107 = vector.broadcast %cst_83 : f32 to vector<1x128xf32>
    %108 = arith.mulf %106, %107 : vector<1x128xf32>
    %109 = arith.mulf %102, %102 : vector<18x128xf32>
    %cst_84 = arith.constant dense<0.000000e+00> : vector<128xf32>
    %110 = vector.multi_reduction <add>, %109, %cst_84 [0] : vector<18x128xf32> to vector<128xf32>
    %111 = vector.shape_cast %110 : vector<128xf32> to vector<1x128xf32>
    %cst_85 = arith.constant 0.055555556 : f32
    %112 = vector.broadcast %cst_85 : f32 to vector<1x128xf32>
    %113 = arith.mulf %111, %112 : vector<1x128xf32>
    %114 = arith.mulf %108, %108 : vector<1x128xf32>
    %115 = arith.subf %113, %114 : vector<1x128xf32>
    %cst_86 = arith.constant 9.99999974E-6 : f32
    %116 = vector.broadcast %cst_86 : f32 to vector<1x128xf32>
    %117 = arith.addf %115, %116 : vector<1x128xf32>
    %118 = math.rsqrt %117 : vector<1x128xf32>
    %119 = arith.mulf %103, %118 : vector<1x128xf32>
    %120 = arith.mulf %108, %119 : vector<1x128xf32>
    %121 = arith.subf %104, %120 : vector<1x128xf32>
    %122 = vector.broadcast %119 : vector<1x128xf32> to vector<18x128xf32>
    %123 = arith.mulf %102, %122 : vector<18x128xf32>
    %124 = vector.broadcast %121 : vector<1x128xf32> to vector<18x128xf32>
    %125 = arith.addf %123, %124 : vector<18x128xf32>
    %cst_87 = arith.constant 0.000000e+00 : f32
    %126 = vector.broadcast %cst_87 : f32 to vector<18x128xf32>
    %127 = arith.cmpf oge, %125, %126 : vector<18x128xf32>
    %cst_88 = arith.constant 2.000000e-01 : f32
    %128 = vector.broadcast %cst_88 : f32 to vector<18x128xf32>
    %129 = arith.mulf %128, %125 : vector<18x128xf32>
    %130 = arith.select %127, %125, %129 : vector<18x128xi1>, vector<18x128xf32>
    %131 = arith.truncf %130 : vector<18x128xf32> to vector<18x128xbf16>
    %c0_89 = arith.constant 0 : index
    %c0_90 = arith.constant 0 : index
    %c0_91 = arith.constant 0 : index
    %132 = vector.load %arg8[%c0_89, %c0_90, %c0_91] : memref<4x8x18xbf16, #tpu.memory_space<vmem>>, vector<1x8x18xbf16>
    %133 = vector.shape_cast %132 : vector<1x8x18xbf16> to vector<8x18xbf16>
    %cst_92 = arith.constant dense<0.000000e+00> : vector<8x128xf32>
    %134 = tpu.matmul %133, %131, %cst_92 {dimension_numbers = #tpu.dot_dimension_numbers<[1], [0], [0], [1], [0, 0, 1, 1], [], []>} : vector<8x18xbf16>, vector<18x128xbf16>, vector<8x128xf32> -> vector<8x128xf32>
    %135 = arith.truncf %134 : vector<8x128xf32> to vector<8x128xbf16>
    %c0_93 = arith.constant 0 : index
    %c0_94 = arith.constant 0 : index
    %c0_95 = arith.constant 0 : index
    %136 = vector.load %arg9[%c0_93, %c0_94, %c0_95] : memref<4x128x128xbf16, #tpu.memory_space<vmem>>, vector<1x128x128xbf16>
    %137 = vector.shape_cast %136 : vector<1x128x128xbf16> to vector<128x128xbf16>
    %cst_96 = arith.constant dense<0.000000e+00> : vector<8x128xf32>
    %138 = tpu.matmul %135, %137, %cst_96 {dimension_numbers = #tpu.dot_dimension_numbers<[1], [0], [0], [1], [0, 0, 1, 1], [], []>} : vector<8x128xbf16>, vector<128x128xbf16>, vector<8x128xf32> -> vector<8x128xf32>
    %c1_97 = arith.constant 1 : index
    %c0_98 = arith.constant 0 : index
    %c0_99 = arith.constant 0 : index
    %139 = vector.load %arg8[%c1_97, %c0_98, %c0_99] : memref<4x8x18xbf16, #tpu.memory_space<vmem>>, vector<1x8x18xbf16>
    %140 = vector.shape_cast %139 : vector<1x8x18xbf16> to vector<8x18xbf16>
    %cst_100 = arith.constant dense<0.000000e+00> : vector<8x128xf32>
    %141 = tpu.matmul %140, %131, %cst_100 {dimension_numbers = #tpu.dot_dimension_numbers<[1], [0], [0], [1], [0, 0, 1, 1], [], []>} : vector<8x18xbf16>, vector<18x128xbf16>, vector<8x128xf32> -> vector<8x128xf32>
    %142 = arith.truncf %141 : vector<8x128xf32> to vector<8x128xbf16>
    %c1_101 = arith.constant 1 : index
    %c0_102 = arith.constant 0 : index
    %c0_103 = arith.constant 0 : index
    %143 = vector.load %arg9[%c1_101, %c0_102, %c0_103] : memref<4x128x128xbf16, #tpu.memory_space<vmem>>, vector<1x128x128xbf16>
    %144 = vector.shape_cast %143 : vector<1x128x128xbf16> to vector<128x128xbf16>
    %cst_104 = arith.constant dense<0.000000e+00> : vector<8x128xf32>
    %145 = tpu.matmul %142, %144, %cst_104 {dimension_numbers = #tpu.dot_dimension_numbers<[1], [0], [0], [1], [0, 0, 1, 1], [], []>} : vector<8x128xbf16>, vector<128x128xbf16>, vector<8x128xf32> -> vector<8x128xf32>
    %146 = arith.addf %138, %145 : vector<8x128xf32>
    %c2_105 = arith.constant 2 : index
    %c0_106 = arith.constant 0 : index
    %c0_107 = arith.constant 0 : index
    %147 = vector.load %arg8[%c2_105, %c0_106, %c0_107] : memref<4x8x18xbf16, #tpu.memory_space<vmem>>, vector<1x8x18xbf16>
    %148 = vector.shape_cast %147 : vector<1x8x18xbf16> to vector<8x18xbf16>
    %cst_108 = arith.constant dense<0.000000e+00> : vector<8x128xf32>
    %149 = tpu.matmul %148, %131, %cst_108 {dimension_numbers = #tpu.dot_dimension_numbers<[1], [0], [0], [1], [0, 0, 1, 1], [], []>} : vector<8x18xbf16>, vector<18x128xbf16>, vector<8x128xf32> -> vector<8x128xf32>
    %150 = arith.truncf %149 : vector<8x128xf32> to vector<8x128xbf16>
    %c2_109 = arith.constant 2 : index
    %c0_110 = arith.constant 0 : index
    %c0_111 = arith.constant 0 : index
    %151 = vector.load %arg9[%c2_109, %c0_110, %c0_111] : memref<4x128x128xbf16, #tpu.memory_space<vmem>>, vector<1x128x128xbf16>
    %152 = vector.shape_cast %151 : vector<1x128x128xbf16> to vector<128x128xbf16>
    %cst_112 = arith.constant dense<0.000000e+00> : vector<8x128xf32>
    %153 = tpu.matmul %150, %152, %cst_112 {dimension_numbers = #tpu.dot_dimension_numbers<[1], [0], [0], [1], [0, 0, 1, 1], [], []>} : vector<8x128xbf16>, vector<128x128xbf16>, vector<8x128xf32> -> vector<8x128xf32>
    %154 = arith.addf %146, %153 : vector<8x128xf32>
    %c3_113 = arith.constant 3 : index
    %c0_114 = arith.constant 0 : index
    %c0_115 = arith.constant 0 : index
    %155 = vector.load %arg8[%c3_113, %c0_114, %c0_115] : memref<4x8x18xbf16, #tpu.memory_space<vmem>>, vector<1x8x18xbf16>
    %156 = vector.shape_cast %155 : vector<1x8x18xbf16> to vector<8x18xbf16>
    %cst_116 = arith.constant dense<0.000000e+00> : vector<8x128xf32>
    %157 = tpu.matmul %156, %131, %cst_116 {dimension_numbers = #tpu.dot_dimension_numbers<[1], [0], [0], [1], [0, 0, 1, 1], [], []>} : vector<8x18xbf16>, vector<18x128xbf16>, vector<8x128xf32> -> vector<8x128xf32>
    %158 = arith.truncf %157 : vector<8x128xf32> to vector<8x128xbf16>
    %c3_117 = arith.constant 3 : index
    %c0_118 = arith.constant 0 : index
    %c0_119 = arith.constant 0 : index
    %159 = vector.load %arg9[%c3_117, %c0_118, %c0_119] : memref<4x128x128xbf16, #tpu.memory_space<vmem>>, vector<1x128x128xbf16>
    %160 = vector.shape_cast %159 : vector<1x128x128xbf16> to vector<128x128xbf16>
    %cst_120 = arith.constant dense<0.000000e+00> : vector<8x128xf32>
    %161 = tpu.matmul %158, %160, %cst_120 {dimension_numbers = #tpu.dot_dimension_numbers<[1], [0], [0], [1], [0, 0, 1, 1], [], []>} : vector<8x128xbf16>, vector<128x128xbf16>, vector<8x128xf32> -> vector<8x128xf32>
    %162 = arith.addf %154, %161 : vector<8x128xf32>
    %c0_121 = arith.constant 0 : index
    %c0_122 = arith.constant 0 : index
    %163 = vector.load %arg10[%c0_121, %c0_122] : memref<1x128xf32, #tpu.memory_space<vmem>>, vector<1x128xf32>
    %164 = vector.broadcast %163 : vector<1x128xf32> to vector<8x128xf32>
    %165 = arith.addf %162, %164 : vector<8x128xf32>
    %c0_123 = arith.constant 0 : index
    %c0_124 = arith.constant 0 : index
    %166 = vector.load %arg11[%c0_123, %c0_124] : memref<8x128xf32, #tpu.memory_space<vmem>>, vector<8x128xf32>
    tpu.vector_store %arg11[%c0_123, %c0_124], %165 {strides = array<i32>} : memref<8x128xf32, #tpu.memory_space<vmem>>, vector<8x128xf32>,
    return
  }
}

</mosaic_0001>

<bundles_post_ra>
// kernel: tpu_custom_call.1
= control target key start
LH: loop header
LB: loop body
LE: loop exit
PB: predicated region body
PF: predicated region fallthrough
CT: control target
= control target key end

     0   :  { %16 = vsyncpa [#allocation3], 0  ;;  %s4585_s0 = inlined_call_operand.hbm [shape: bf16[98,128], index: 0, kind: input, shape index: {}]   ;;  %s4586_s1 = inlined_call_operand.hbm [shape: bf16[128,128], index: 1, kind: input, shape index: {}]   ;;  %s4587_s2 = inlined_call_operand.vmem [shape: f32[1,128], index: 2, kind: input, shape index: {}]   ;;  %s4588_s3 = inlined_call_operand.vmem [shape: f32[1,128], index: 3, kind: input, shape index: {}]   ;;  %s4589_s4 = inlined_call_operand.hbm [shape: bf16[9,18,98], index: 4, kind: input, shape index: {}]   ;;  %s4590_s5 = inlined_call_operand.hbm [shape: bf16[9,128,128], index: 5, kind: input, shape index: {}]   ;;  %s4591_s6 = inlined_call_operand.vmem [shape: f32[1,128], index: 6, kind: input, shape index: {}]   ;;  %s4592_s7 = inlined_call_operand.vmem [shape: f32[1,128], index: 7, kind: input, shape index: {}]   ;;  %s4593_s8 = inlined_call_operand.vmem [shape: bf16[4,8,18], index: 8, kind: input, shape index: {}]   ;;  %s4594_s9 = inlined_call_operand.hbm [shape: bf16[4,128,128], index: 9, kind: input, shape index: {}]   ;;  %s4595_s10 = inlined_call_operand.vmem [shape: f32[1,128], index: 10, kind: input, shape index: {}]   ;;  %s4596_s11 = inlined_call_operand.hbm [shape: f32[8,128], index: 11, kind: output, shape index: {}]  }
   0x1   :  { %17 = vsyncpa [#allocation6], 0 }
   0x2   :  { %18 = vsyncpa [#allocation9], 0 }
   0x3   :  { %19 = vsyncpa [#allocation4], 0  ;;  %s4035_s17 = smov [#allocation5]   ;;  %s4036_s19 = smov [#allocation8]  }
   0x4   :  { %s37_s18 = sshll.u32 %s4035_s17, 4  ;;  %s65_s20 = sshll.u32 %s4036_s19, 4  ;;  %s38_s18 = int_to_ptr.vmem [resolvable:$true] %s37_s18  ;;  %s4105_s20 = int_to_ptr.vmem [resolvable:$true] %s65_s20 }
   0x5   :  { %s3895_s23 = scalar_lea.hbm %s4586_s1, 1024 }
   0x6   :  { %p3896_p0 = scmp.ne.s32.totalorder %s4586_s1, %s3895_s23  ;;  %p3899_p1 = scmp.lt.u32.totalorder %s3895_s23, %s4586_s1 }
   0x8   :  { %p3901_p2 = pnand %p3899_p1, %p3896_p0 }
   0xa   :  { %3904 = shalt.err (!%p3901_p2)
}
   0xb   :  { %s3905_s28 = scalar_lea.vmem %s38_s18, 1024  ;;  %p3910_p4 = scmp.lt.s32.totalorder %s38_s18, %s38_s18 }
   0xc   :  { %p3906_p3 = scmp.ne.s32.totalorder %s38_s18, %s3905_s28  ;;  %p3911_p5 = scmp.lt.s32.totalorder %s3905_s28, %s3905_s28 }
   0xe   :  { %p3912_p6 = por %p3911_p5, %p3910_p4 }
  0x10   :  { %p3913_p7 = pnand %p3912_p6, %p3906_p3 }
  0x12   :  { %3916 = shalt.err (!%p3913_p7)
}
  0x13   :  { %s4037_s29 = smov 64   ;;  %s4038_s30 = smov 4  }
  0x14   :  { %43 = dma.hbm_to_vmem [thread:$0]  %s4586_s1, 1024, %s38_s18, [#allocation6], %s4037_s29, %s4037_s29, %s4038_s30  }
  0x15   :  { %s3917_s16 = scalar_lea.hbm %s4590_s5, 9216 }
  0x16   :  { %p3918_p8 = scmp.ne.s32.totalorder %s4590_s5, %s3917_s16  ;;  %p3921_p9 = scmp.lt.u32.totalorder %s3917_s16, %s4590_s5 }
  0x18   :  { %p3923_p10 = pnand %p3921_p9, %p3918_p8 }
  0x1a   :  { %3926 = shalt.err (!%p3923_p10)
}
  0x1b   :  { %s3927_s23 = scalar_lea.vmem %s4105_s20, 9216  ;;  %p3932_p12 = scmp.lt.s32.totalorder %s4105_s20, %s4105_s20 }
  0x1c   :  { %p3928_p11 = scmp.ne.s32.totalorder %s4105_s20, %s3927_s23  ;;  %p3933_p13 = scmp.lt.s32.totalorder %s3927_s23, %s3927_s23 }
  0x1e   :  { %p3934_p0 = por %p3933_p13, %p3932_p12 }
  0x20   :  { %p3935_p1 = pnand %p3934_p0, %p3928_p11 }
  0x22   :  { %3938 = shalt.err (!%p3935_p1)
}
  0x23   :  { %71 = dma.hbm_to_vmem [thread:$0]  %s4590_s5, 9216, %s4105_s20, [#allocation9], %s4037_s29, %s4037_s29, %s4038_s30  }
  0x24   :  { %s4039_s24 = smov [#allocation2]   ;;  %s4040_s26 = smov [#allocation7]  }
  0x25   :  { %s25_s25 = sshll.u32 %s4039_s24, 4  ;;  %s53_s27 = sshll.u32 %s4040_s26, 4  ;;  %s26_s25 = int_to_ptr.vmem [resolvable:$true] %s25_s25  ;;  %s4142_s27 = int_to_ptr.vmem [resolvable:$true] %s53_s27 }
  0x26   :  { %s3939_s13 = scalar_lea.hbm %s4585_s0, 832 }
  0x27   :  { %p3940_p2 = scmp.ne.s32.totalorder %s4585_s0, %s3939_s13  ;;  %p3943_p3 = scmp.lt.u32.totalorder %s3939_s13, %s4585_s0 }
  0x29   :  { %p3945_p4 = pnand %p3943_p3, %p3940_p2 }
  0x2b   :  { %3948 = shalt.err (!%p3945_p4)
}
  0x2c   :  { %s3949_s5 = scalar_lea.vmem %s26_s25, 832  ;;  %p3954_p6 = scmp.lt.s32.totalorder %s26_s25, %s26_s25 }
  0x2d   :  { %p3950_p5 = scmp.ne.s32.totalorder %s26_s25, %s3949_s5  ;;  %p3955_p7 = scmp.lt.s32.totalorder %s3949_s5, %s3949_s5 }
  0x2f   :  { %p3956_p8 = por %p3955_p7, %p3954_p6 }
  0x31   :  { %p3957_p9 = pnand %p3956_p8, %p3950_p5 }
  0x33   :  { %3960 = shalt.err (!%p3957_p9)
}
  0x34   :  { %31 = dma.hbm_to_vmem [thread:$0]  %s4585_s0, 832, %s26_s25, [#allocation3], %s4037_s29, %s4037_s29, %s4038_s30  }
  0x35   :  { %s3961_s23 = scalar_lea.hbm %s4589_s4, 1728 }
  0x36   :  { %p3962_p10 = scmp.ne.s32.totalorder %s4589_s4, %s3961_s23  ;;  %p3965_p11 = scmp.lt.u32.totalorder %s3961_s23, %s4589_s4 }
  0x38   :  { %p3967_p12 = pnand %p3965_p11, %p3962_p10 }
  0x3a   :  { %3970 = shalt.err (!%p3967_p12)
}
  0x3b   :  { %s3971_s28 = scalar_lea.vmem %s4142_s27, 1728  ;;  %p3976_p0 = scmp.lt.s32.totalorder %s4142_s27, %s4142_s27 }
  0x3c   :  { %p3972_p13 = scmp.ne.s32.totalorder %s4142_s27, %s3971_s28  ;;  %p3977_p1 = scmp.lt.s32.totalorder %s3971_s28, %s3971_s28 }
  0x3e   :  { %p3978_p2 = por %p3977_p1, %p3976_p0 }
  0x40   :  { %p3979_p3 = pnand %p3978_p2, %p3972_p13 }
  0x42   :  { %3982 = shalt.err (!%p3979_p3)
}
  0x43   :  { %59 = dma.hbm_to_vmem [thread:$0]  %s4589_s4, 1728, %s4142_s27, [#allocation6], %s4037_s29, %s4037_s29, %s4038_s30  }
  0x44   :  { %s4041_s12 = smov [#allocation10]   ;;  %s3983_s16 = scalar_lea.hbm %s4594_s9, 4096 }
  0x45   :  { %s83_s13 = sshll.u32 %s4041_s12, 4  ;;  %p3984_p4 = scmp.ne.s32.totalorder %s4594_s9, %s3983_s16  ;;  %s84_s13 = int_to_ptr.vmem [resolvable:$true] %s83_s13 }
  0x46   :  { %p3987_p5 = scmp.lt.u32.totalorder %s3983_s16, %s4594_s9 }
  0x48   :  { %p3989_p6 = pnand %p3987_p5, %p3984_p4 }
  0x4a   :  { %3992 = shalt.err (!%p3989_p6)
}
  0x4b   :  { %s3993_s21 = scalar_lea.vmem %s84_s13, 4096  ;;  %p3998_p8 = scmp.lt.s32.totalorder %s84_s13, %s84_s13 }
  0x4c   :  { %p3994_p7 = scmp.ne.s32.totalorder %s84_s13, %s3993_s21  ;;  %p3999_p9 = scmp.lt.s32.totalorder %s3993_s21, %s3993_s21 }
  0x4e   :  { %p4000_p10 = por %p3999_p9, %p3998_p8 }
  0x50   :  { %p4001_p11 = pnand %p4000_p10, %p3994_p7 }
  0x52   :  { %4004 = shalt.err (!%p4001_p11)
}
  0x53   :  { %89 = dma.hbm_to_vmem [thread:$0]  %s4594_s9, 4096, %s84_s13, [#allocation9], %s4037_s29, %s4037_s29, %s4038_s30  }
  0x54   :  { %4027 = dma.done.wait [#allocation3], 832  }
  0x55   :  { %4028 = vsyncadd [#allocation3], 4294966464 }
  0x56   :  { %4029 = dma.done.wait [#allocation6], 2752  }
  0x57   :  { %4030 = vsyncadd [#allocation6], 4294964544 }
  0x58   :  { %4031 = dma.done.wait [#allocation9], 13312  }
  0x59   :  { %4032 = vsyncadd [#allocation9], 4294953984  ;;  %v4042_v0 = vmov 0.0   ;;  %vm4043_vm0 = vmmov 0   ;;  %v3754_v1 = vld [vmem:[#allocation5] sm:$0xff]   ;;  %v3755_v2 = vld [vmem:[#allocation5 + $0x8] sm:$0xff]  }
  0x5a   :  { %3205 = vmatprep.subr.bf16.mxu0 %v4042_v0  ;;  %3221 = vmatprep.mubr.msk.bf16.mxu0 %vm4043_vm0, %v4042_v0  ;;  %v3756_v3 = vld [vmem:[#allocation5 + $0x10] sm:$0xff]   ;;  %v3757_v4 = vld [vmem:[#allocation5 + $0x18] sm:$0xff]   ;;  %v3758_v5 = vld [vmem:[#allocation5 + $0x20] sm:$0xff]   ;;  %vm471_vm1 = vcmask 801792   ;;  %vm326_vm2 = vcmask 1041408   ;;  %s4044_s13 = smov [#allocation11]  }
  0x5b   :  { %3206 = vmatpush3.bf16.msra.mxu0 %v3754_v1  ;;  %v3759_v6 = vld [vmem:[#allocation5 + $0x28] sm:$0xff]   ;;  %v3760_v7 = vld [vmem:[#allocation5 + $0x30] sm:$0xff]   ;;  %v3761_v8 = vld [vmem:[#allocation5 + $0x38] sm:$0xff]   ;;  %s2797_s14 = sshll.u32 %s4044_s13, 4  ;;  %s2798_s14 = int_to_ptr.vmem [resolvable:$true] %s2797_s14 }
  0x5c   :  { %3207 = vmatprep.subr.bf16.mxu0 %v4042_v0  ;;  %v3762_v9 = vld [vmem:[#allocation2] sm:$0xff]   ;;  %v3763_v10 = vld [vmem:[#allocation2 + $0x8] sm:$0xff]   ;;  %v3764_v11 = vld [vmem:[#allocation2 + $0x10] sm:$0xff]   ;;  %s4005_s15 = scalar_lea.vmem %s2798_s14, 128  ;;  %p4010_p13 = scmp.lt.s32.totalorder %s2798_s14, %s2798_s14 }
  0x5d   :  { %v3765_v12 = vld [vmem:[#allocation2 + $0x18] sm:$0xff]   ;;  %v3766_v13 = vld [vmem:[#allocation2 + $0x20] sm:$0xff]   ;;  %v3767_v14 = vld [vmem:[#allocation2 + $0x28] sm:$0xff]   ;;  %p4006_p12 = scmp.ne.s32.totalorder %s2798_s14, %s4005_s15  ;;  %p4011_p0 = scmp.lt.s32.totalorder %s4005_s15, %s4005_s15 }
  0x5e   :  { %v3768_v15 = vld [vmem:[#allocation2 + $0x30] ss:$0 sps:$4 sm:$0x11]   ;;  %v3769_v24 = vld [vmem:[#allocation7] sm:$0xff]  }
  0x5f   :  { %3208 = vmatpush3.bf16.msra.mxu0 %v3755_v2  ;;  %3263 = vmatprep.mubr.msk.bf16.mxu1 %vm471_vm1, %v3769_v24  ;;  %p4012_p1 = por %p4011_p0, %p4010_p13 }
  0x60   :  { %3209 = vmatprep.subr.bf16.mxu0 %v4042_v0 }
  0x61   :  { %p4013_p2 = pnand %p4012_p1, %p4006_p12 }
  0x63   :  { %3210 = vmatpush3.bf16.msra.mxu0 %v3756_v3 }
  0x64   :  { %3211 = vmatprep.subr.bf16.mxu0 %v4042_v0 }
  0x67   :  { %3212 = vmatpush3.bf16.msra.mxu0 %v3757_v4 }
  0x68   :  { %3213 = vmatprep.subr.bf16.mxu0 %v4042_v0 }
  0x6b   :  { %3214 = vmatpush3.bf16.msra.mxu0 %v3758_v5 }
  0x6c   :  { %3215 = vmatprep.subr.bf16.mxu0 %v4042_v0 }
  0x6f   :  { %3216 = vmatpush3.bf16.msra.mxu0 %v3759_v6 }
  0x70   :  { %3217 = vmatprep.subr.bf16.mxu0 %v4042_v0 }
  0x73   :  { %3218 = vmatpush3.bf16.msra.mxu0 %v3760_v7 }
  0x74   :  { %3219 = vmatprep.subr.bf16.mxu0 %v4042_v0 }
  0x77   :  { %3220 = vmatpush3.bf16.msra.mxu0 %v3761_v8 }
  0x7a   :  { %3222 = vmatmul.mubr.bf16.vlgmr.msra.gmra.mrb[0].mxu0 %v3762_v9 }
  0x7b   :  { %3225 = vmatprep.mubr.msk.bf16.mxu0 %vm4043_vm0, %v4042_v0 }
  0x82   :  { %3226 = vmatmul.mubr.bf16.gmra.mrb[4].mxu0 %v3763_v10 }
  0x83   :  { %3229 = vmatprep.mubr.msk.bf16.mxu0 %vm4043_vm0, %v4042_v0 }
  0x8a   :  { %3230 = vmatmul.mubr.bf16.gmra.mrb[8].mxu0 %v3764_v11 }
  0x8b   :  { %3233 = vmatprep.mubr.msk.bf16.mxu0 %vm4043_vm0, %v4042_v0 }
  0x92   :  { %3234 = vmatmul.mubr.bf16.gmra.mrb[12].mxu0 %v3765_v12 }
  0x93   :  { %3237 = vmatprep.mubr.msk.bf16.mxu0 %vm4043_vm0, %v4042_v0 }
  0x9a   :  { %3238 = vmatmul.mubr.bf16.gmra.mrb[16].mxu0 %v3766_v13 }
  0x9b   :  { %3241 = vmatprep.mubr.msk.bf16.mxu0 %vm4043_vm0, %v4042_v0 }
  0xa2   :  { %3242 = vmatmul.mubr.bf16.gmra.mrb[20].mxu0 %v3767_v14 }
  0xa3   :  { %3245 = vmatprep.mubr.msk.bf16.mxu0 %vm4043_vm0, %v4042_v0 }
  0xaa   :  { %3246 = vmatmul.mubr.bf16.gmra.mrb[24].mxu0 %v3768_v15 }
 0x14d   :  { %v4216_v16 = vpop.f32.mrb[0].mxu0 }
 0x14e   :  { %v3223_v17 = vpop.f32.mrb[1].mxu0  ;;  %v336_v19 = vmul.f32 %v4216_v16, %v4216_v16 }
 0x14f   :  { %v4218_v18 = vpop.f32.mrb[2].mxu0 }
 0x150   :  { %v315_v20 = vadd.f32 %v4218_v18, %v4216_v16  ;;  %v337_v21 = vmul.f32 %v4218_v18, %v4218_v18  ;;  %v3224_v22 = vpop.f32.mrb[3].mxu0 }
 0x152   :  { %v349_v23 = vadd.f32 %v337_v21, %v336_v19 }
 0x155   :  { %v4227_v25 = vpop.f32.mrb[4].mxu0 }
 0x156   :  { %v316_v26 = vadd.f32 %v315_v20, %v4227_v25  ;;  %v338_v27 = vmul.f32 %v4227_v25, %v4227_v25  ;;  %v3227_v28 = vpop.f32.mrb[5].mxu0 }
 0x157   :  { %v4232_v29 = vpop.f32.mrb[6].mxu0 }
 0x158   :  { %v350_v30 = vadd.f32 %v349_v23, %v338_v27  ;;  %v317_v31 = vadd.f32 %v316_v26, %v4232_v29  ;;  %v339_v32 = vmul.f32 %v4232_v29, %v4232_v29  ;;  %v3228_v33 = vpop.f32.mrb[7].mxu0 }
 0x15a   :  { %v351_v34 = vadd.f32 %v350_v30, %v339_v32 }
 0x15d   :  { %v4237_v35 = vpop.f32.mrb[8].mxu0 }
 0x15e   :  { %v318_v36 = vadd.f32 %v317_v31, %v4237_v35  ;;  %v340_v37 = vmul.f32 %v4237_v35, %v4237_v35  ;;  %v3231_v38 = vpop.f32.mrb[9].mxu0 }
 0x15f   :  { %v4242_v39 = vpop.f32.mrb[10].mxu0 }
 0x160   :  { %v352_v40 = vadd.f32 %v351_v34, %v340_v37  ;;  %v319_v41 = vadd.f32 %v318_v36, %v4242_v39  ;;  %v341_v42 = vmul.f32 %v4242_v39, %v4242_v39  ;;  %v3232_v43 = vpop.f32.mrb[11].mxu0 }
 0x162   :  { %v353_v44 = vadd.f32 %v352_v40, %v341_v42 }
 0x165   :  { %v4247_v45 = vpop.f32.mrb[12].mxu0 }
 0x166   :  { %v320_v46 = vadd.f32 %v319_v41, %v4247_v45  ;;  %v342_v47 = vmul.f32 %v4247_v45, %v4247_v45  ;;  %v3235_v48 = vpop.f32.mrb[13].mxu0 }
 0x167   :  { %v4252_v49 = vpop.f32.mrb[14].mxu0 }
 0x168   :  { %v354_v50 = vadd.f32 %v353_v44, %v342_v47  ;;  %v321_v51 = vadd.f32 %v320_v46, %v4252_v49  ;;  %v343_v52 = vmul.f32 %v4252_v49, %v4252_v49  ;;  %v3236_v53 = vpop.f32.mrb[15].mxu0  ;;  %v377_v44 = vlaneseq  ;;  %v313_v47 = vld [vmem:[%s4587_s2] sm:$0x1] }
 0x16a   :  { %v355_v54 = vadd.f32 %v354_v50, %v343_v52  ;;  %v378_v46 = vshrl.u32 %v377_v44, 7  ;;  %v314_v52 = vld [vmem:[%s4588_s3] sm:$0x1] }
 0x16c   :  { %v4272_v48 = vsub.s32 0, %v378_v46 }
 0x16d   :  { %v4257_v55 = vpop.f32.mrb[16].mxu0 }
 0x16e   :  { %v322_v56 = vadd.f32 %v321_v51, %v4257_v55  ;;  %v344_v57 = vmul.f32 %v4257_v55, %v4257_v55  ;;  %v3239_v58 = vpop.f32.mrb[17].mxu0 }
 0x16f   :  { %v4262_v59 = vpop.f32.mrb[18].mxu0 }
 0x170   :  { %v356_v60 = vadd.f32 %v355_v54, %v344_v57  ;;  %v323_v61 = vadd.f32 %v322_v56, %v4262_v59  ;;  %v345_v62 = vmul.f32 %v4262_v59, %v4262_v59  ;;  %v3240_v63 = vpop.f32.mrb[19].mxu0 }
 0x172   :  { %v357_v1 = vadd.f32 %v356_v60, %v345_v62 }
 0x175   :  { %v299_v2 = vpop.f32.mrb[20].mxu0 }
 0x176   :  { %v324_v3 = vadd.f32 %v323_v61, %v299_v2  ;;  %v346_v4 = vmul.f32 %v299_v2, %v299_v2  ;;  %v3243_v5 = vpop.f32.mrb[21].mxu0 }
 0x177   :  { %v302_v6 = vpop.f32.mrb[22].mxu0 }
 0x178   :  { %v358_v7 = vadd.f32 %v357_v1, %v346_v4  ;;  %v325_v8 = vadd.f32 %v324_v3, %v302_v6  ;;  %v347_v9 = vmul.f32 %v302_v6, %v302_v6  ;;  %v3244_v10 = vpop.f32.mrb[23].mxu0 }
 0x17a   :  { %v359_v11 = vadd.f32 %v358_v7, %v347_v9 }
 0x17d   :  { %v307_v12 = vpop.f32.mrb[24].mxu0 }
 0x17e   :  { %v327_v13 = vsel %vm326_vm2, %v307_v12, 0.0  ;;  %v348_v14 = vmul.f32 %v307_v12, %v307_v12  ;;  %v3247_v15 = vpop.f32.mrb[25].mxu0 }
 0x17f   :  { %v328_v17 = vadd.f32 %v327_v13, %v325_v8  ;;  %v310_v19 = vpop.f32.mrb[26].mxu0 }
 0x180   :  { %v360_v20 = vsel %vm326_vm2, %v348_v14, 0.0  ;;  %v3248_v21 = vpop.f32.mrb[27].mxu0 }
 0x181   :  { %v329_v22 = vrot.slane %v328_v17, 4  ;;  %v361_v23 = vadd.f32 %v360_v20, %v359_v11 }
 0x183   :  { %v330_v24 = vadd.f32 %v329_v22, %v328_v17  ;;  %v362_v26 = vrot.slane %v361_v23, 4 }
 0x185   :  { %v331_v27 = vrot.slane %v330_v24, 2  ;;  %v363_v28 = vadd.f32 %v362_v26, %v361_v23 }
 0x187   :  { %v332_v30 = vadd.f32 %v331_v27, %v330_v24  ;;  %v364_v31 = vrot.slane %v363_v28, 2 }
 0x189   :  { %v333_v32 = vrot.slane %v332_v30, 1  ;;  %v365_v33 = vadd.f32 %v364_v31, %v363_v28 }
 0x18b   :  { %v334_v34 = vadd.f32 %v333_v32, %v332_v30  ;;  %v366_v36 = vrot.slane %v365_v33, 1 }
 0x18d   :  { %v335_v37 = vmul.f32 0.010204081, %v334_v34  ;;  %v367_v38 = vadd.f32 %v366_v36, %v365_v33 }
 0x18f   :  { %v368_v40 = vmul.f32 0.010204081, %v367_v38  ;;  %v369_v41 = vmul.f32 %v335_v37, %v335_v37 }
 0x191   :  { %v370_v42 = vsub.f32 %v368_v40, %v369_v41 }
 0x193   :  { %v371_v43 = vadd.f32 1e-05, %v370_v42 }
 0x195   :  { %3891 = vrsqrt.f32 %v371_v43 }
 0x19f   :  { %v3892_v50 = vpop.eup %3891 }
 0x1a0   :  { %v373_v51 = vmul.f32 %v3892_v50, %v313_v47 }
 0x1a2   :  { %v374_v53 = vmul.f32 %v373_v51, %v335_v37  ;;  %v380_v54 = vrot.slane %v373_v51, %v4272_v48 }
 0x1a4   :  { %v375_v56 = vsub.f32 %v314_v52, %v374_v53  ;;  %v382_v57 = vmul.f32 %v380_v54, %v4216_v16  ;;  %v383_v58 = vmul.f32 %v380_v54, %v4218_v18  ;;  %v384_v60 = vmul.f32 %v380_v54, %v4227_v25 }
 0x1a5   :  { %v385_v61 = vmul.f32 %v380_v54, %v4232_v29  ;;  %v386_v62 = vmul.f32 %v380_v54, %v4237_v35  ;;  %v387_v63 = vmul.f32 %v380_v54, %v4242_v39  ;;  %v388_v1 = vmul.f32 %v380_v54, %v4247_v45 }
 0x1a6   :  { %v389_v3 = vmul.f32 %v380_v54, %v4252_v49  ;;  %v390_v4 = vmul.f32 %v380_v54, %v4257_v55  ;;  %v391_v5 = vmul.f32 %v380_v54, %v4262_v59  ;;  %v392_v7 = vmul.f32 %v380_v54, %v299_v2 }
 0x1a7   :  { %v393_v16 = vmul.f32 %v380_v54, %v302_v6  ;;  %v394_v8 = vmul.f32 %v380_v54, %v307_v12  ;;  %v399_v18 = vrot.slane %v375_v56, %v4272_v48  ;;  %v3770_v56 = vld [vmem:[#allocation7 + $0x8] ss:$0 sps:$4 sm:$0x11]  }
 0x1a9   :  { %v401_v25 = vadd.f32 %v399_v18, %v382_v57  ;;  %v402_v9 = vadd.f32 %v399_v18, %v383_v58  ;;  %v403_v29 = vadd.f32 %v399_v18, %v384_v60  ;;  %v404_v10 = vadd.f32 %v399_v18, %v385_v61  ;;  %v3771_v57 = vld [vmem:[#allocation7 + $0xc] sm:$0xff]   ;;  %v3772_v58 = vld [vmem:[#allocation7 + $0x14] ss:$0 sps:$4 sm:$0x11]   ;;  %v3773_v60 = vld [vmem:[#allocation7 + $0x18] sm:$0xff]  }
 0x1aa   :  { %v405_v35 = vadd.f32 %v399_v18, %v386_v62  ;;  %v406_v11 = vadd.f32 %v399_v18, %v387_v63  ;;  %v407_v39 = vadd.f32 %v399_v18, %v388_v1  ;;  %v408_v13 = vadd.f32 %v399_v18, %v389_v3  ;;  %v3774_v61 = vld [vmem:[#allocation7 + $0x20] ss:$0 sps:$4 sm:$0x11]   ;;  %v3775_v62 = vld [vmem:[#allocation7 + $0x24] sm:$0xff]   ;;  %v3783_v63 = vld [vmem:[#allocation8 + $0x40] sm:$0xff]  }
 0x1ab   :  { %v409_v45 = vadd.f32 %v399_v18, %v390_v4  ;;  %v410_v14 = vadd.f32 %v399_v18, %v391_v5  ;;  %v411_v49 = vadd.f32 %v399_v18, %v392_v7  ;;  %v412_v15 = vadd.f32 %v399_v18, %v393_v16  ;;  %3285 = vmatprep.subr.bf16.mxu0 %v3783_v63  ;;  %v3785_v1 = vld [vmem:[#allocation8 + $0x48] sm:$0xff]   ;;  %v3787_v3 = vld [vmem:[#allocation8 + $0x50] sm:$0xff]   ;;  %v3776_v4 = vld [vmem:[#allocation7 + $0x2c] ss:$0 sps:$4 sm:$0x11]  }
 0x1ac   :  { %v413_v55 = vadd.f32 %v399_v18, %v394_v8  ;;  %vm414_vm3 = vcmp.ge.f32.partialorder %v401_v25, 0.0  ;;  %vm415_vm4 = vcmp.ge.f32.partialorder %v402_v9, 0.0  ;;  %vm416_vm5 = vcmp.ge.f32.partialorder %v403_v29, 0.0  ;;  %3286 = vmatpush3.bf16.msra.mxu0 %v3783_v63  ;;  %v3777_v5 = vld [vmem:[#allocation7 + $0x30] sm:$0xff]   ;;  %v3788_v7 = vld [vmem:[#allocation8 + $0x58] sm:$0xff]   ;;  %v3791_v18 = vld [vmem:[#allocation8 + $0x70] sm:$0xff]  }
 0x1ad   :  { %vm417_vm6 = vcmp.ge.f32.partialorder %v404_v10, 0.0  ;;  %vm418_vm7 = vcmp.ge.f32.partialorder %v405_v35, 0.0  ;;  %vm419_vm8 = vcmp.ge.f32.partialorder %v406_v11, 0.0  ;;  %vm420_vm9 = vcmp.ge.f32.partialorder %v407_v39, 0.0  ;;  %3287 = vmatprep.subr.bf16.mxu0 %v3785_v1  ;;  %v3789_v16 = vld [vmem:[#allocation8 + $0x60] sm:$0xff]   ;;  %v3790_v8 = vld [vmem:[#allocation8 + $0x68] sm:$0xff]  }
 0x1ae   :  { %vm421_vm10 = vcmp.ge.f32.partialorder %v408_v13, 0.0  ;;  %vm422_vm11 = vcmp.ge.f32.partialorder %v409_v45, 0.0  ;;  %vm423_vm12 = vcmp.ge.f32.partialorder %v410_v14, 0.0  ;;  %vm424_vm13 = vcmp.ge.f32.partialorder %v411_v49, 0.0  ;;  %v3815_v63 = vld [vmem:[#allocation8 + $0xe0] sm:$0xff]  }
 0x1af   :  { %vm425_vm14 = vcmp.ge.f32.partialorder %v412_v15, 0.0  ;;  %v427_v59 = vmul.f32 0.2, %v401_v25  ;;  %v428_v2 = vmul.f32 0.2, %v402_v9  ;;  %vm426_vm15 = vcmp.ge.f32.partialorder %v413_v55, 0.0 }
 0x1b0   :  { %v429_v6 = vmul.f32 0.2, %v403_v29  ;;  %v430_v12 = vmul.f32 0.2, %v404_v10  ;;  %v431_v17 = vmul.f32 0.2, %v405_v35  ;;  %3288 = vmatpush3.bf16.msra.mxu0 %v3785_v1 }
 0x1b1   :  { %v432_v19 = vmul.f32 0.2, %v406_v11  ;;  %v433_v20 = vmul.f32 0.2, %v407_v39  ;;  %v434_v21 = vmul.f32 0.2, %v408_v13  ;;  %v440_v26 = vsel %vm414_vm3, %v401_v25, %v427_v59  ;;  %3289 = vmatprep.subr.bf16.mxu0 %v3787_v3 }
 0x1b2   :  { %v435_v22 = vmul.f32 0.2, %v409_v45  ;;  %v436_v23 = vmul.f32 0.2, %v410_v14  ;;  %v437_v24 = vmul.f32 0.2, %v411_v49  ;;  %v441_v28 = vsel %vm415_vm4, %v402_v9, %v428_v2 }
 0x1b3   :  { %v438_v27 = vmul.f32 0.2, %v412_v15  ;;  %v442_v30 = vsel %vm416_vm5, %v403_v29, %v429_v6  ;;  %v443_v31 = vsel %vm417_vm6, %v404_v10, %v430_v12  ;;  %v444_v32 = vsel %vm418_vm7, %v405_v35, %v431_v17  ;;  %v3778_v25 = vld [vmem:[#allocation7 + $0x38] ss:$0 sps:$4 sm:$0x11]   ;;  %v3779_v9 = vld [vmem:[#allocation7 + $0x3c] sm:$0xff]  }
 0x1b4   :  { %v445_v33 = vsel %vm419_vm8, %v406_v11, %v432_v19  ;;  %v446_v34 = vsel %vm420_vm9, %v407_v39, %v433_v20  ;;  %v447_v36 = vsel %vm421_vm10, %v408_v13, %v434_v21  ;;  %v448_v37 = vsel %vm422_vm11, %v409_v45, %v435_v22  ;;  %3290 = vmatpush3.bf16.msra.mxu0 %v3787_v3  ;;  %v3792_v29 = vld [vmem:[#allocation8 + $0x78] sm:$0xff]   ;;  %v4407_v10 = vld [vmem:[#allocation8] sm:$0xff]   ;;  %v3784_v13 = vld [vmem:[#allocation7 + $0x54] sm:$0xff]  }
 0x1b5   :  { %v449_v38 = vsel %vm423_vm12, %v410_v14, %v436_v23  ;;  %v450_v40 = vsel %vm424_vm13, %v411_v49, %v437_v24  ;;  %v451_v41 = vsel %vm425_vm14, %v412_v15, %v438_v27  ;;  %v4301_v42 = vpack.c.bf16 %v441_v28, %v440_v26  ;;  %3291 = vmatprep.subr.bf16.mxu0 %v3788_v7  ;;  %v3780_v35 = vld [vmem:[#allocation7 + $0x44] ss:$0 sps:$4 sm:$0x11]   ;;  %v3781_v11 = vld [vmem:[#allocation7 + $0x48] sm:$0xff]   ;;  %v3794_v23 = vld [vmem:[#allocation8 + $0x8] sm:$0xff]  }
 0x1b6   :  { %v4303_v43 = vpack.c.bf16 %v443_v31, %v442_v30  ;;  %v4305_v44 = vpack.c.bf16 %v445_v33, %v444_v32  ;;  %v4307_v46 = vpack.c.bf16 %v447_v36, %v446_v34  ;;  %v4309_v47 = vpack.c.bf16 %v449_v38, %v448_v37  ;;  %v3782_v39 = vld [vmem:[#allocation7 + $0x50] ss:$0 sps:$4 sm:$0x11]   ;;  %v3786_v45 = vld [vmem:[#allocation7 + $0x5c] ss:$0 sps:$4 sm:$0x11]  }
 0x1b7   :  { %v4311_v50 = vpack.c.bf16 %v451_v41, %v450_v40  ;;  %3249 = vmatprep.subr.bf16.mxu1 %v4301_v42  ;;  %v439_v51 = vmul.f32 0.2, %v413_v55  ;;  %vm478_vm3 = vcmask 1040384   ;;  %v3802_v14 = vld [vmem:[#allocation7 + $0x60] sm:$0xff]   ;;  %v3797_v27 = vld [vmem:[#allocation8 + $0x20] sm:$0xff]   ;;  %v3798_v28 = vld [vmem:[#allocation8 + $0x28] sm:$0xff]  }
 0x1b8   :  { %3250 = vmatpush3.bf16.msra.mxu1 %v4301_v42  ;;  %3292 = vmatpush3.bf16.msra.mxu0 %v3788_v7  ;;  %v3803_v6 = vld [vmem:[#allocation7 + $0x68] ss:$0 sps:$4 sm:$0x11]   ;;  %v3795_v24 = vld [vmem:[#allocation8 + $0x10] sm:$0xff]   ;;  %v3801_v38 = vld [vmem:[#allocation8 + $0x80] sm:$0xff]   ;;  %vm2175_vm5 = vcmask 146432  }
 0x1b9   :  { %3251 = vmatprep.subr.bf16.mxu1 %v4303_v43  ;;  %v452_v52 = vsel %vm426_vm15, %v413_v55, %v439_v51  ;;  %3293 = vmatprep.subr.bf16.mxu0 %v3789_v16  ;;  %v3796_v26 = vld [vmem:[#allocation8 + $0x18] sm:$0xff]   ;;  %v3799_v30 = vld [vmem:[#allocation8 + $0x30] sm:$0xff]   ;;  %v3804_v41 = vld [vmem:[#allocation8 + $0x88] sm:$0xff]  }
 0x1ba   :  { %v4324_v53 = vpack.c.bf16 %v452_v52, %v452_v52  ;;  %v3800_v32 = vld [vmem:[#allocation8 + $0x38] sm:$0xff]   ;;  %v3816_v3 = vld [vmem:[#allocation8 + $0xe8] sm:$0xff]  }
 0x1bc   :  { %3252 = vmatpush3.bf16.msra.mxu1 %v4303_v43  ;;  %v4331_v54 = vsel %vm478_vm3, %v4324_v53, 0  ;;  %3294 = vmatpush3.bf16.msra.mxu0 %v3789_v16 }
 0x1bd   :  { %3253 = vmatprep.subr.bf16.mxu1 %v4305_v44  ;;  %3295 = vmatprep.subr.bf16.mxu0 %v3790_v8 }
 0x1c0   :  { %3254 = vmatpush3.bf16.msra.mxu1 %v4305_v44  ;;  %3296 = vmatpush3.bf16.msra.mxu0 %v3790_v8  ;;  %v3817_v8 = vld [vmem:[#allocation8 + $0xf0] sm:$0xff]  }
 0x1c1   :  { %3255 = vmatprep.subr.bf16.mxu1 %v4307_v46  ;;  %3297 = vmatprep.subr.bf16.mxu0 %v3791_v18 }
 0x1c4   :  { %3256 = vmatpush3.bf16.msra.mxu1 %v4307_v46  ;;  %3298 = vmatpush3.bf16.msra.mxu0 %v3791_v18  ;;  %v3818_v18 = vld [vmem:[#allocation8 + $0xf8] sm:$0xff]  }
 0x1c5   :  { %3257 = vmatprep.subr.bf16.mxu1 %v4309_v47  ;;  %3299 = vmatprep.subr.bf16.mxu0 %v3792_v29 }
 0x1c8   :  { %3258 = vmatpush3.bf16.msra.mxu1 %v4309_v47  ;;  %3300 = vmatpush3.bf16.msra.mxu0 %v3792_v29  ;;  %v3820_v29 = vld [vmem:[#allocation8 + $0x108] sm:$0xff]  }
 0x1c9   :  { %3259 = vmatprep.subr.bf16.mxu1 %v4311_v50  ;;  %3305 = vmatprep.subr.bf16.mxu0 %v4407_v10 }
 0x1cc   :  { %3260 = vmatpush3.bf16.msra.mxu1 %v4311_v50 }
 0x1cd   :  { %3735 = vmatprep.subr.msk.bf16.mxu1 %vm478_vm3, %v4324_v53 }
 0x1d0   :  { %3262 = vmatpush3.bf16.msra.mxu1 %v4331_v54 }
 0x1d1   :  { %3267 = vmatprep.subr.bf16.mxu1 %v4301_v42 }
 0x1d3   :  { %3264 = vmatmul.mubr.msk.bf16.vlgmr.msra.gmra.mrb[0].mxu1 %vm471_vm1, %v3770_v56  ;;  %v3810_v56 = vld [vmem:[#allocation8 + $0xb8] sm:$0xff]  }
 0x1d4   :  { %3268 = vmatpush3.bf16.msra.mxu1 %v4301_v42  ;;  %3281 = vmatprep.mubr.msk.bf16.mxu1 %vm471_vm1, %v3771_v57  ;;  %v3811_v57 = vld [vmem:[#allocation8 + $0xc0] sm:$0xff]  }
 0x1d5   :  { %3269 = vmatprep.subr.bf16.mxu1 %v4303_v43 }
 0x1d8   :  { %3270 = vmatpush3.bf16.msra.mxu1 %v4303_v43 }
 0x1d9   :  { %3271 = vmatprep.subr.bf16.mxu1 %v4305_v44 }
 0x1dc   :  { %3272 = vmatpush3.bf16.msra.mxu1 %v4305_v44 }
 0x1dd   :  { %3273 = vmatprep.subr.bf16.mxu1 %v4307_v46 }
 0x1e0   :  { %3274 = vmatpush3.bf16.msra.mxu1 %v4307_v46 }
 0x1e1   :  { %3275 = vmatprep.subr.bf16.mxu1 %v4309_v47 }
 0x1e4   :  { %3276 = vmatpush3.bf16.msra.mxu1 %v4309_v47 }
 0x1e5   :  { %3277 = vmatprep.subr.bf16.mxu1 %v4311_v50 }
 0x1e8   :  { %3278 = vmatpush3.bf16.msra.mxu1 %v4311_v50 }
 0x1e9   :  { %3736 = vmatprep.subr.msk.bf16.mxu1 %vm478_vm3, %v4324_v53 }
 0x1ec   :  { %3280 = vmatpush3.bf16.msra.mxu1 %v4331_v54 }
 0x1ed   :  { %3325 = vmatprep.subr.bf16.mxu1 %v4301_v42 }
 0x1ef   :  { %3282 = vmatmul.mubr.msk.bf16.vlgmr.msra.gmra.mrb[4].mxu1 %vm471_vm1, %v3772_v58 }
 0x1f0   :  { %3326 = vmatpush3.bf16.msra.mxu1 %v4301_v42  ;;  %3339 = vmatprep.mubr.msk.bf16.mxu1 %vm471_vm1, %v3773_v60  ;;  %v3812_v60 = vld [vmem:[#allocation8 + $0xc8] sm:$0xff]  }
 0x1f1   :  { %3327 = vmatprep.subr.bf16.mxu1 %v4303_v43 }
 0x1f4   :  { %3328 = vmatpush3.bf16.msra.mxu1 %v4303_v43 }
 0x1f5   :  { %3329 = vmatprep.subr.bf16.mxu1 %v4305_v44 }
 0x1f8   :  { %3330 = vmatpush3.bf16.msra.mxu1 %v4305_v44 }
 0x1f9   :  { %3331 = vmatprep.subr.bf16.mxu1 %v4307_v46 }
 0x1fc   :  { %3332 = vmatpush3.bf16.msra.mxu1 %v4307_v46 }
 0x1fd   :  { %3333 = vmatprep.subr.bf16.mxu1 %v4309_v47 }
 0x200   :  { %3334 = vmatpush3.bf16.msra.mxu1 %v4309_v47 }
 0x201   :  { %3335 = vmatprep.subr.bf16.mxu1 %v4311_v50 }
 0x204   :  { %3336 = vmatpush3.bf16.msra.mxu1 %v4311_v50 }
 0x205   :  { %3737 = vmatprep.subr.msk.bf16.mxu1 %vm478_vm3, %v4324_v53 }
 0x208   :  { %3338 = vmatpush3.bf16.msra.mxu1 %v4331_v54 }
 0x209   :  { %3363 = vmatprep.subr.bf16.mxu1 %v4301_v42 }
 0x20b   :  { %3340 = vmatmul.mubr.msk.bf16.vlgmr.msra.gmra.mrb[8].mxu1 %vm471_vm1, %v3774_v61  ;;  %v3813_v61 = vld [vmem:[#allocation8 + $0xd0] sm:$0xff]  }
 0x20c   :  { %3364 = vmatpush3.bf16.msra.mxu1 %v4301_v42  ;;  %3377 = vmatprep.mubr.msk.bf16.mxu1 %vm471_vm1, %v3775_v62  ;;  %v3814_v62 = vld [vmem:[#allocation8 + $0xd8] sm:$0xff]  }
 0x20d   :  { %3365 = vmatprep.subr.bf16.mxu1 %v4303_v43 }
 0x210   :  { %3366 = vmatpush3.bf16.msra.mxu1 %v4303_v43 }
 0x211   :  { %3367 = vmatprep.subr.bf16.mxu1 %v4305_v44 }
 0x214   :  { %3368 = vmatpush3.bf16.msra.mxu1 %v4305_v44 }
 0x215   :  { %3369 = vmatprep.subr.bf16.mxu1 %v4307_v46 }
 0x218   :  { %3370 = vmatpush3.bf16.msra.mxu1 %v4307_v46 }
 0x219   :  { %3371 = vmatprep.subr.bf16.mxu1 %v4309_v47 }
 0x21c   :  { %3372 = vmatpush3.bf16.msra.mxu1 %v4309_v47 }
 0x21d   :  { %3373 = vmatprep.subr.bf16.mxu1 %v4311_v50 }
 0x220   :  { %3374 = vmatpush3.bf16.msra.mxu1 %v4311_v50 }
 0x221   :  { %3738 = vmatprep.subr.msk.bf16.mxu1 %vm478_vm3, %v4324_v53 }
 0x224   :  { %3376 = vmatpush3.bf16.msra.mxu1 %v4331_v54 }
 0x225   :  { %3401 = vmatprep.subr.bf16.mxu1 %v4301_v42 }
 0x227   :  { %3378 = vmatmul.mubr.msk.bf16.vlgmr.msra.gmra.mrb[12].mxu1 %vm471_vm1, %v3776_v4 }
 0x228   :  { %3402 = vmatpush3.bf16.msra.mxu1 %v4301_v42  ;;  %3415 = vmatprep.mubr.msk.bf16.mxu1 %vm471_vm1, %v3777_v5 }
 0x229   :  { %3403 = vmatprep.subr.bf16.mxu1 %v4303_v43 }
 0x22c   :  { %3404 = vmatpush3.bf16.msra.mxu1 %v4303_v43 }
 0x22d   :  { %3405 = vmatprep.subr.bf16.mxu1 %v4305_v44 }
 0x230   :  { %3406 = vmatpush3.bf16.msra.mxu1 %v4305_v44 }
 0x231   :  { %3407 = vmatprep.subr.bf16.mxu1 %v4307_v46 }
 0x234   :  { %3408 = vmatpush3.bf16.msra.mxu1 %v4307_v46 }
 0x235   :  { %3409 = vmatprep.subr.bf16.mxu1 %v4309_v47 }
 0x238   :  { %3410 = vmatpush3.bf16.msra.mxu1 %v4309_v47 }
 0x239   :  { %3411 = vmatprep.subr.bf16.mxu1 %v4311_v50 }
 0x23c   :  { %3412 = vmatpush3.bf16.msra.mxu1 %v4311_v50 }
 0x23d   :  { %3739 = vmatprep.subr.msk.bf16.mxu1 %vm478_vm3, %v4324_v53 }
 0x240   :  { %3414 = vmatpush3.bf16.msra.mxu1 %v4331_v54 }
 0x241   :  { %3439 = vmatprep.subr.bf16.mxu1 %v4301_v42 }
 0x243   :  { %3416 = vmatmul.mubr.msk.bf16.vlgmr.msra.gmra.mrb[16].mxu1 %vm471_vm1, %v3778_v25  ;;  %v3819_v25 = vld [vmem:[#allocation8 + $0x100] sm:$0xff]  }
 0x244   :  { %3440 = vmatpush3.bf16.msra.mxu1 %v4301_v42  ;;  %3453 = vmatprep.mubr.msk.bf16.mxu1 %vm471_vm1, %v3779_v9 }
 0x245   :  { %3441 = vmatprep.subr.bf16.mxu1 %v4303_v43 }
 0x248   :  { %3442 = vmatpush3.bf16.msra.mxu1 %v4303_v43 }
 0x249   :  { %3443 = vmatprep.subr.bf16.mxu1 %v4305_v44 }
 0x24c   :  { %3444 = vmatpush3.bf16.msra.mxu1 %v4305_v44 }
 0x24d   :  { %3445 = vmatprep.subr.bf16.mxu1 %v4307_v46 }
 0x250   :  { %3446 = vmatpush3.bf16.msra.mxu1 %v4307_v46 }
 0x251   :  { %3447 = vmatprep.subr.bf16.mxu1 %v4309_v47 }
 0x254   :  { %3448 = vmatpush3.bf16.msra.mxu1 %v4309_v47 }
 0x255   :  { %3449 = vmatprep.subr.bf16.mxu1 %v4311_v50 }
 0x258   :  { %3450 = vmatpush3.bf16.msra.mxu1 %v4311_v50 }
 0x259   :  { %3740 = vmatprep.subr.msk.bf16.mxu1 %vm478_vm3, %v4324_v53 }
 0x25c   :  { %3452 = vmatpush3.bf16.msra.mxu1 %v4331_v54 }
 0x25d   :  { %3477 = vmatprep.subr.bf16.mxu1 %v4301_v42 }
 0x25f   :  { %3454 = vmatmul.mubr.msk.bf16.vlgmr.msra.gmra.mrb[20].mxu1 %vm471_vm1, %v3780_v35  ;;  %v3822_v35 = vld [vmem:[#allocation8 + $0x118] sm:$0xff]  }
 0x260   :  { %3478 = vmatpush3.bf16.msra.mxu1 %v4301_v42  ;;  %3491 = vmatprep.mubr.msk.bf16.mxu1 %vm471_vm1, %v3781_v11 }
 0x261   :  { %3479 = vmatprep.subr.bf16.mxu1 %v4303_v43 }
 0x264   :  { %3480 = vmatpush3.bf16.msra.mxu1 %v4303_v43 }
 0x265   :  { %3481 = vmatprep.subr.bf16.mxu1 %v4305_v44 }
 0x268   :  { %3482 = vmatpush3.bf16.msra.mxu1 %v4305_v44 }
 0x269   :  { %3483 = vmatprep.subr.bf16.mxu1 %v4307_v46 }
 0x26c   :  { %3484 = vmatpush3.bf16.msra.mxu1 %v4307_v46 }
 0x26d   :  { %3485 = vmatprep.subr.bf16.mxu1 %v4309_v47 }
 0x270   :  { %3486 = vmatpush3.bf16.msra.mxu1 %v4309_v47 }
 0x271   :  { %3487 = vmatprep.subr.bf16.mxu1 %v4311_v50 }
 0x274   :  { %3488 = vmatpush3.bf16.msra.mxu1 %v4311_v50 }
 0x275   :  { %3741 = vmatprep.subr.msk.bf16.mxu1 %vm478_vm3, %v4324_v53 }
 0x278   :  { %3490 = vmatpush3.bf16.msra.mxu1 %v4331_v54 }
 0x279   :  { %3515 = vmatprep.subr.bf16.mxu1 %v4301_v42 }
 0x27b   :  { %3492 = vmatmul.mubr.msk.bf16.vlgmr.msra.gmra.mrb[24].mxu1 %vm471_vm1, %v3782_v39  ;;  %v3823_v39 = vld [vmem:[#allocation8 + $0x120] sm:$0xff]  }
 0x27c   :  { %3516 = vmatpush3.bf16.msra.mxu1 %v4301_v42  ;;  %3529 = vmatprep.mubr.msk.bf16.mxu1 %vm471_vm1, %v3784_v13 }
 0x27d   :  { %3517 = vmatprep.subr.bf16.mxu1 %v4303_v43 }
 0x280   :  { %3518 = vmatpush3.bf16.msra.mxu1 %v4303_v43 }
 0x281   :  { %3519 = vmatprep.subr.bf16.mxu1 %v4305_v44 }
 0x284   :  { %3520 = vmatpush3.bf16.msra.mxu1 %v4305_v44 }
 0x285   :  { %3521 = vmatprep.subr.bf16.mxu1 %v4307_v46 }
 0x288   :  { %3522 = vmatpush3.bf16.msra.mxu1 %v4307_v46 }
 0x289   :  { %3523 = vmatprep.subr.bf16.mxu1 %v4309_v47 }
 0x28c   :  { %3524 = vmatpush3.bf16.msra.mxu1 %v4309_v47 }
 0x28d   :  { %3525 = vmatprep.subr.bf16.mxu1 %v4311_v50 }
 0x290   :  { %3526 = vmatpush3.bf16.msra.mxu1 %v4311_v50 }
 0x291   :  { %3742 = vmatprep.subr.msk.bf16.mxu1 %vm478_vm3, %v4324_v53 }
 0x294   :  { %3528 = vmatpush3.bf16.msra.mxu1 %v4331_v54 }
 0x295   :  { %3553 = vmatprep.subr.bf16.mxu1 %v4301_v42 }
 0x297   :  { %3530 = vmatmul.mubr.msk.bf16.vlgmr.msra.gmra.mrb[28].mxu1 %vm471_vm1, %v3786_v45 }
 0x298   :  { %3554 = vmatpush3.bf16.msra.mxu1 %v4301_v42  ;;  %3567 = vmatprep.mubr.msk.bf16.mxu1 %vm471_vm1, %v3802_v14  ;;  %v3805_v42 = vld [vmem:[#allocation8 + $0x90] sm:$0xff]  }
 0x299   :  { %3555 = vmatprep.subr.bf16.mxu1 %v4303_v43 }
 0x29c   :  { %3556 = vmatpush3.bf16.msra.mxu1 %v4303_v43  ;;  %v3806_v43 = vld [vmem:[#allocation8 + $0x98] sm:$0xff]  }
 0x29d   :  { %3557 = vmatprep.subr.bf16.mxu1 %v4305_v44 }
 0x2a0   :  { %3558 = vmatpush3.bf16.msra.mxu1 %v4305_v44  ;;  %v3807_v44 = vld [vmem:[#allocation8 + $0xa0] sm:$0xff]  }
 0x2a1   :  { %3559 = vmatprep.subr.bf16.mxu1 %v4307_v46 }
 0x2a4   :  { %3560 = vmatpush3.bf16.msra.mxu1 %v4307_v46  ;;  %v3808_v46 = vld [vmem:[#allocation8 + $0xa8] sm:$0xff]  }
 0x2a5   :  { %3561 = vmatprep.subr.bf16.mxu1 %v4309_v47 }
 0x2a6   :  { %v3265_v49 = vpop.f32.mrb[0].mxu1 }
 0x2a7   :  { %v516_v15 = vpop.f32.mrb[1].mxu1  ;;  %v531_v40 = vpack.c.bf16 %v3265_v49, %v3265_v49 }
 0x2a8   :  { %v3266_v55 = vpop.f32.mrb[2].mxu1  ;;  %3562 = vmatpush3.bf16.msra.mxu1 %v4309_v47 }
 0x2a9   :  { %v519_v59 = vpop.f32.mrb[3].mxu1  ;;  %3563 = vmatprep.subr.bf16.mxu1 %v4311_v50  ;;  %v3825_v55 = vld [vmem:[#allocation8 + $0x130] sm:$0xff]  }
 0x2aa   :  { %v530_v2 = vpack.c.bf16 %v519_v59, %v516_v15  ;;  %v3824_v15 = vld [vmem:[#allocation8 + $0x128] sm:$0xff]   ;;  %v3826_v59 = vld [vmem:[#allocation8 + $0x138] sm:$0xff]  }
 0x2ac   :  { %3564 = vmatpush3.bf16.msra.mxu1 %v4311_v50  ;;  %v3809_v50 = vld [vmem:[#allocation8 + $0xb0] sm:$0xff]  }
 0x2ad   :  { %3743 = vmatprep.subr.msk.bf16.mxu1 %vm478_vm3, %v4324_v53 }
 0x2b0   :  { %3566 = vmatpush3.bf16.msra.mxu1 %v4331_v54 }
 0x2b1   :  { %3591 = vmatprep.subr.bf16.mxu1 %v4042_v0 }
 0x2b3   :  { %3568 = vmatmul.mubr.msk.bf16.vlgmr.msra.gmra.mrb[32].mxu1 %vm471_vm1, %v3803_v6 }
 0x2b4   :  { %3595 = vmatprep.mubr.msk.bf16.mxu1 %vm4043_vm0, %v4042_v0 }
 0x2c2   :  { %v3283_v12 = vpop.f32.mrb[4].mxu1 }
 0x2c3   :  { %v600_v17 = vpop.f32.mrb[5].mxu1  ;;  %v615_v22 = vpack.c.bf16 %v3283_v12, %v3283_v12  ;;  %v3828_v12 = vld [vmem:[#allocation8 + $0x148] sm:$0xff]  }
 0x2c4   :  { %v3284_v19 = vpop.f32.mrb[6].mxu1 }
 0x2c5   :  { %v603_v20 = vpop.f32.mrb[7].mxu1 }
 0x2c6   :  { %v614_v21 = vpack.c.bf16 %v603_v20, %v600_v17  ;;  %v3829_v17 = vld [vmem:[#allocation8 + $0x150] sm:$0xff]   ;;  %v3830_v20 = vld [vmem:[#allocation8 + $0x158] sm:$0xff]  }
 0x2c8   :  { %3301 = vmatprep.mubr.bf16.mxu0 %v614_v21 }
 0x2c9   :  { %3302 = vmatmul.mubr.bf16.vlgmr.msra.gmra.mrb[28].mxu0 %v615_v22 }
 0x2ca   :  { %3306 = vmatpush3.bf16.msra.mxu0 %v4407_v10  ;;  %3321 = vmatprep.mubr.bf16.mxu0 %v530_v2  ;;  %v3821_v10 = vld [vmem:[#allocation8 + $0x110] sm:$0xff]   ;;  %v3827_v2 = vld [vmem:[#allocation8 + $0x140] sm:$0xff]  }
 0x2cb   :  { %3307 = vmatprep.subr.bf16.mxu0 %v3794_v23 }
 0x2ce   :  { %3308 = vmatpush3.bf16.msra.mxu0 %v3794_v23 }
 0x2cf   :  { %3309 = vmatprep.subr.bf16.mxu0 %v3795_v24 }
 0x2d2   :  { %3310 = vmatpush3.bf16.msra.mxu0 %v3795_v24 }
 0x2d3   :  { %3311 = vmatprep.subr.bf16.mxu0 %v3796_v26 }
 0x2d6   :  { %3312 = vmatpush3.bf16.msra.mxu0 %v3796_v26  ;;  %v3831_v26 = vld [vmem:[#allocation8 + $0x160] sm:$0xff]  }
 0x2d7   :  { %3313 = vmatprep.subr.bf16.mxu0 %v3797_v27 }
 0x2da   :  { %3314 = vmatpush3.bf16.msra.mxu0 %v3797_v27  ;;  %v3832_v27 = vld [vmem:[#allocation8 + $0x168] sm:$0xff]  }
 0x2db   :  { %3315 = vmatprep.subr.bf16.mxu0 %v3798_v28 }
 0x2de   :  { %3316 = vmatpush3.bf16.msra.mxu0 %v3798_v28  ;;  %v3341_v31 = vpop.f32.mrb[8].mxu1  ;;  %v3833_v28 = vld [vmem:[#allocation8 + $0x170] sm:$0xff]  }
 0x2df   :  { %3317 = vmatprep.subr.bf16.mxu0 %v3799_v30  ;;  %v877_v33 = vpop.f32.mrb[9].mxu1  ;;  %v892_v58 = vpack.c.bf16 %v3341_v31, %v3341_v31  ;;  %v3835_v31 = vld [vmem:[#allocation8 + $0x180] sm:$0xff]  }
 0x2e0   :  { %v3342_v34 = vpop.f32.mrb[10].mxu1 }
 0x2e1   :  { %v880_v36 = vpop.f32.mrb[11].mxu1 }
 0x2e2   :  { %3318 = vmatpush3.bf16.msra.mxu0 %v3799_v30  ;;  %v891_v37 = vpack.c.bf16 %v880_v36, %v877_v33  ;;  %v3834_v30 = vld [vmem:[#allocation8 + $0x178] sm:$0xff]   ;;  %v3836_v33 = vld [vmem:[#allocation8 + $0x188] sm:$0xff]   ;;  %v3837_v36 = vld [vmem:[#allocation8 + $0x190] sm:$0xff]  }
 0x2e3   :  { %3319 = vmatprep.subr.bf16.mxu0 %v3800_v32 }
 0x2e6   :  { %3320 = vmatpush3.bf16.msra.mxu0 %v3800_v32 }
 0x2e7   :  { %3343 = vmatprep.subr.bf16.mxu0 %v3801_v38 }
 0x2e9   :  { %3322 = vmatmul.mubr.bf16.vlgmr.msra.gmra.mrb[28].mxu0 %v531_v40 }
 0x2ea   :  { %3344 = vmatpush3.bf16.msra.mxu0 %v3801_v38  ;;  %3359 = vmatprep.mubr.bf16.mxu0 %v891_v37 }
 0x2eb   :  { %3345 = vmatprep.subr.bf16.mxu0 %v3804_v41 }
 0x2ee   :  { %3346 = vmatpush3.bf16.msra.mxu0 %v3804_v41 }
 0x2ef   :  { %3347 = vmatprep.subr.bf16.mxu0 %v3805_v42 }
 0x2f2   :  { %3348 = vmatpush3.bf16.msra.mxu0 %v3805_v42  ;;  %v3838_v42 = vld [vmem:[#allocation8 + $0x198] sm:$0xff]  }
 0x2f3   :  { %3349 = vmatprep.subr.bf16.mxu0 %v3806_v43 }
 0x2f6   :  { %3350 = vmatpush3.bf16.msra.mxu0 %v3806_v43  ;;  %v3839_v43 = vld [vmem:[#allocation8 + $0x1a0] sm:$0xff]  }
 0x2f7   :  { %3351 = vmatprep.subr.bf16.mxu0 %v3807_v44 }
 0x2fa   :  { %3352 = vmatpush3.bf16.msra.mxu0 %v3807_v44  ;;  %v3379_v47 = vpop.f32.mrb[12].mxu1  ;;  %v3840_v44 = vld [vmem:[#allocation8 + $0x1a8] sm:$0xff]  }
 0x2fb   :  { %3353 = vmatprep.subr.bf16.mxu0 %v3808_v46  ;;  %v1061_v51 = vpop.f32.mrb[13].mxu1  ;;  %v1076_v9 = vpack.c.bf16 %v3379_v47, %v3379_v47  ;;  %v3842_v47 = vld [vmem:[#allocation8 + $0x1b8] sm:$0xff]  }
 0x2fc   :  { %v3380_v52 = vpop.f32.mrb[14].mxu1 }
 0x2fd   :  { %v1064_v53 = vpop.f32.mrb[15].mxu1 }
 0x2fe   :  { %3354 = vmatpush3.bf16.msra.mxu0 %v3808_v46  ;;  %v1075_v54 = vpack.c.bf16 %v1064_v53, %v1061_v51  ;;  %v3841_v46 = vld [vmem:[#allocation8 + $0x1b0] sm:$0xff]   ;;  %v3844_v53 = vld [vmem:[#allocation8 + $0x1c8] sm:$0xff]  }
 0x2ff   :  { %3355 = vmatprep.subr.bf16.mxu0 %v3809_v50 }
 0x302   :  { %3356 = vmatpush3.bf16.msra.mxu0 %v3809_v50  ;;  %v3843_v50 = vld [vmem:[#allocation8 + $0x1c0] sm:$0xff]  }
 0x303   :  { %3357 = vmatprep.subr.bf16.mxu0 %v3810_v56 }
 0x306   :  { %3358 = vmatpush3.bf16.msra.mxu0 %v3810_v56 }
 0x307   :  { %3381 = vmatprep.subr.bf16.mxu0 %v3811_v57 }
 0x309   :  { %3360 = vmatmul.mubr.bf16.vlgmr.msra.gmra.mrb[28].mxu0 %v892_v58 }
 0x30a   :  { %3382 = vmatpush3.bf16.msra.mxu0 %v3811_v57  ;;  %3397 = vmatprep.mubr.bf16.mxu0 %v1075_v54 }
 0x30b   :  { %3383 = vmatprep.subr.bf16.mxu0 %v3812_v60 }
 0x30e   :  { %3384 = vmatpush3.bf16.msra.mxu0 %v3812_v60  ;;  %v3845_v60 = vld [vmem:[#allocation8 + $0x1d0] sm:$0xff]  }
 0x30f   :  { %3385 = vmatprep.subr.bf16.mxu0 %v3813_v61 }
 0x312   :  { %3386 = vmatpush3.bf16.msra.mxu0 %v3813_v61  ;;  %v3846_v61 = vld [vmem:[#allocation8 + $0x1d8] sm:$0xff]  }
 0x313   :  { %3387 = vmatprep.subr.bf16.mxu0 %v3814_v62 }
 0x316   :  { %3388 = vmatpush3.bf16.msra.mxu0 %v3814_v62  ;;  %v3417_v1 = vpop.f32.mrb[16].mxu1  ;;  %v3847_v62 = vld [vmem:[#allocation8 + $0x1e0] sm:$0xff]  }
 0x317   :  { %3389 = vmatprep.subr.bf16.mxu0 %v3815_v63  ;;  %v1245_v4 = vpop.f32.mrb[17].mxu1  ;;  %v1260_v6 = vpack.c.bf16 %v3417_v1, %v3417_v1  ;;  %v3849_v1 = vld [vmem:[#allocation8 + $0x1f0] sm:$0xff]  }
 0x318   :  { %v3418_v5 = vpop.f32.mrb[18].mxu1 }
 0x319   :  { %v1248_v7 = vpop.f32.mrb[19].mxu1 }
 0x31a   :  { %3390 = vmatpush3.bf16.msra.mxu0 %v3815_v63  ;;  %v1259_v16 = vpack.c.bf16 %v1248_v7, %v1245_v4  ;;  %v3848_v63 = vld [vmem:[#allocation8 + $0x1e8] sm:$0xff]   ;;  %v3851_v4 = vld [vmem:[#allocation8 + $0x200] sm:$0xff]  }
 0x31b   :  { %3391 = vmatprep.subr.bf16.mxu0 %v3816_v3  ;;  %v3852_v7 = vld [vmem:[#allocation8 + $0x208] sm:$0xff]  }
 0x31e   :  { %3392 = vmatpush3.bf16.msra.mxu0 %v3816_v3  ;;  %v3850_v3 = vld [vmem:[#allocation8 + $0x1f8] sm:$0xff]  }
 0x31f   :  { %3393 = vmatprep.subr.bf16.mxu0 %v3817_v8 }
 0x322   :  { %3394 = vmatpush3.bf16.msra.mxu0 %v3817_v8  ;;  %v3854_v8 = vld [vmem:[#allocation8 + $0x218] sm:$0xff]  }
 0x323   :  { %3395 = vmatprep.subr.bf16.mxu0 %v3818_v18 }
 0x326   :  { %3396 = vmatpush3.bf16.msra.mxu0 %v3818_v18  ;;  %v3855_v18 = vld [vmem:[#allocation8 + $0x220] sm:$0xff]  }
 0x327   :  { %3419 = vmatprep.subr.bf16.mxu0 %v3819_v25 }
 0x329   :  { %3398 = vmatmul.mubr.bf16.vlgmr.msra.gmra.mrb[28].mxu0 %v1076_v9  ;;  %v3857_v9 = vld [vmem:[#allocation8 + $0x230] sm:$0xff]  }
 0x32a   :  { %3420 = vmatpush3.bf16.msra.mxu0 %v3819_v25  ;;  %3435 = vmatprep.mubr.bf16.mxu0 %v1259_v16  ;;  %v3853_v16 = vld [vmem:[#allocation8 + $0x210] sm:$0xff]   ;;  %v3856_v25 = vld [vmem:[#allocation8 + $0x228] sm:$0xff]  }
 0x32b   :  { %3421 = vmatprep.subr.bf16.mxu0 %v3820_v29 }
 0x32e   :  { %3422 = vmatpush3.bf16.msra.mxu0 %v3820_v29  ;;  %v3858_v29 = vld [vmem:[#allocation8 + $0x238] sm:$0xff]  }
 0x32f   :  { %3423 = vmatprep.subr.bf16.mxu0 %v3821_v10 }
 0x332   :  { %3424 = vmatpush3.bf16.msra.mxu0 %v3821_v10  ;;  %v3455_v11 = vpop.f32.mrb[20].mxu1 }
 0x333   :  { %3425 = vmatprep.subr.bf16.mxu0 %v3822_v35  ;;  %v1429_v13 = vpop.f32.mrb[21].mxu1  ;;  %v1444_v32 = vpack.c.bf16 %v3455_v11, %v3455_v11 }
 0x334   :  { %v3456_v45 = vpop.f32.mrb[22].mxu1 }
 0x335   :  { %v1432_v14 = vpop.f32.mrb[23].mxu1 }
 0x336   :  { %3426 = vmatpush3.bf16.msra.mxu0 %v3822_v35  ;;  %v1443_v49 = vpack.c.bf16 %v1432_v14, %v1429_v13 }
 0x337   :  { %3427 = vmatprep.subr.bf16.mxu0 %v3823_v39 }
 0x33a   :  { %3428 = vmatpush3.bf16.msra.mxu0 %v3823_v39 }
 0x33b   :  { %3429 = vmatprep.subr.bf16.mxu0 %v3824_v15 }
 0x33e   :  { %3430 = vmatpush3.bf16.msra.mxu0 %v3824_v15 }
 0x33f   :  { %3431 = vmatprep.subr.bf16.mxu0 %v3825_v55 }
 0x342   :  { %3432 = vmatpush3.bf16.msra.mxu0 %v3825_v55 }
 0x343   :  { %3433 = vmatprep.subr.bf16.mxu0 %v3826_v59 }
 0x346   :  { %3434 = vmatpush3.bf16.msra.mxu0 %v3826_v59 }
 0x347   :  { %3457 = vmatprep.subr.bf16.mxu0 %v3827_v2 }
 0x349   :  { %3436 = vmatmul.mubr.bf16.vlgmr.msra.gmra.mrb[28].mxu0 %v1260_v6 }
 0x34a   :  { %3458 = vmatpush3.bf16.msra.mxu0 %v3827_v2  ;;  %3473 = vmatprep.mubr.bf16.mxu0 %v1443_v49 }
 0x34b   :  { %3459 = vmatprep.subr.bf16.mxu0 %v3828_v12 }
 0x34e   :  { %3460 = vmatpush3.bf16.msra.mxu0 %v3828_v12  ;;  %v3493_v19 = vpop.f32.mrb[24].mxu1 }
 0x34f   :  { %3461 = vmatprep.subr.bf16.mxu0 %v3829_v17  ;;  %v1613_v21 = vpop.f32.mrb[25].mxu1  ;;  %v1628_v52 = vpack.c.bf16 %v3493_v19, %v3493_v19 }
 0x350   :  { %v3494_v22 = vpop.f32.mrb[26].mxu1 }
 0x351   :  { %v1616_v23 = vpop.f32.mrb[27].mxu1 }
 0x352   :  { %3462 = vmatpush3.bf16.msra.mxu0 %v3829_v17  ;;  %v1627_v24 = vpack.c.bf16 %v1616_v23, %v1613_v21 }
 0x353   :  { %3463 = vmatprep.subr.bf16.mxu0 %v3830_v20 }
 0x356   :  { %3464 = vmatpush3.bf16.msra.mxu0 %v3830_v20 }
 0x357   :  { %3465 = vmatprep.subr.bf16.mxu0 %v3831_v26 }
 0x35a   :  { %3466 = vmatpush3.bf16.msra.mxu0 %v3831_v26 }
 0x35b   :  { %3467 = vmatprep.subr.bf16.mxu0 %v3832_v27 }
 0x35e   :  { %3468 = vmatpush3.bf16.msra.mxu0 %v3832_v27 }
 0x35f   :  { %3469 = vmatprep.subr.bf16.mxu0 %v3833_v28 }
 0x362   :  { %3470 = vmatpush3.bf16.msra.mxu0 %v3833_v28 }
 0x363   :  { %3471 = vmatprep.subr.bf16.mxu0 %v3834_v30 }
 0x366   :  { %3472 = vmatpush3.bf16.msra.mxu0 %v3834_v30 }
 0x367   :  { %3495 = vmatprep.subr.bf16.mxu0 %v3835_v31 }
 0x369   :  { %3474 = vmatmul.mubr.bf16.vlgmr.msra.gmra.mrb[28].mxu0 %v1444_v32 }
 0x36a   :  { %3496 = vmatpush3.bf16.msra.mxu0 %v3835_v31  ;;  %3511 = vmatprep.mubr.bf16.mxu0 %v1627_v24  ;;  %v3531_v34 = vpop.f32.mrb[28].mxu1 }
 0x36b   :  { %3497 = vmatprep.subr.bf16.mxu0 %v3836_v33  ;;  %v1797_v37 = vpop.f32.mrb[29].mxu1  ;;  %v1812_v5 = vpack.c.bf16 %v3531_v34, %v3531_v34 }
 0x36c   :  { %v3532_v38 = vpop.f32.mrb[30].mxu1 }
 0x36d   :  { %v1800_v40 = vpop.f32.mrb[31].mxu1  ;;  %v2113_v38 = vld [vmem:[%s4591_s6] sm:$0x1] }
 0x36e   :  { %3498 = vmatpush3.bf16.msra.mxu0 %v3836_v33  ;;  %v1811_v41 = vpack.c.bf16 %v1800_v40, %v1797_v37 }
 0x36f   :  { %3499 = vmatprep.subr.bf16.mxu0 %v3837_v36 }
 0x372   :  { %3500 = vmatpush3.bf16.msra.mxu0 %v3837_v36 }
 0x373   :  { %3501 = vmatprep.subr.bf16.mxu0 %v3838_v42 }
 0x376   :  { %3502 = vmatpush3.bf16.msra.mxu0 %v3838_v42  ;;  %v2114_v42 = vld [vmem:[%s4592_s7] sm:$0x1] }
 0x377   :  { %3503 = vmatprep.subr.bf16.mxu0 %v3839_v43 }
 0x37a   :  { %3504 = vmatpush3.bf16.msra.mxu0 %v3839_v43 }
 0x37b   :  { %3505 = vmatprep.subr.bf16.mxu0 %v3840_v44 }
 0x37e   :  { %3506 = vmatpush3.bf16.msra.mxu0 %v3840_v44 }
 0x37f   :  { %3507 = vmatprep.subr.bf16.mxu0 %v3841_v46 }
 0x382   :  { %3508 = vmatpush3.bf16.msra.mxu0 %v3841_v46 }
 0x383   :  { %3509 = vmatprep.subr.bf16.mxu0 %v3842_v47 }
 0x386   :  { %3510 = vmatpush3.bf16.msra.mxu0 %v3842_v47  ;;  %v3569_v51 = vpop.f32.mrb[32].mxu1 }
 0x387   :  { %3533 = vmatprep.subr.bf16.mxu0 %v3843_v50  ;;  %v1981_v54 = vpop.f32.mrb[33].mxu1  ;;  %v1996_v10 = vpack.c.bf16 %v3569_v51, %v3569_v51 }
 0x388   :  { %v3570_v56 = vpop.f32.mrb[34].mxu1 }
 0x389   :  { %3512 = vmatmul.mubr.bf16.vlgmr.msra.gmra.mrb[28].mxu0 %v1628_v52  ;;  %v1984_v57 = vpop.f32.mrb[35].mxu1 }
 0x38a   :  { %3534 = vmatpush3.bf16.msra.mxu0 %v3843_v50  ;;  %3549 = vmatprep.mubr.bf16.mxu0 %v1811_v41  ;;  %v1995_v58 = vpack.c.bf16 %v1984_v57, %v1981_v54 }
 0x38b   :  { %3535 = vmatprep.subr.bf16.mxu0 %v3844_v53 }
 0x38e   :  { %3536 = vmatpush3.bf16.msra.mxu0 %v3844_v53 }
 0x38f   :  { %3537 = vmatprep.subr.bf16.mxu0 %v3845_v60 }
 0x392   :  { %3538 = vmatpush3.bf16.msra.mxu0 %v3845_v60 }
 0x393   :  { %3539 = vmatprep.subr.bf16.mxu0 %v3846_v61 }
 0x396   :  { %3540 = vmatpush3.bf16.msra.mxu0 %v3846_v61 }
 0x397   :  { %3541 = vmatprep.subr.bf16.mxu0 %v3847_v62 }
 0x39a   :  { %3542 = vmatpush3.bf16.msra.mxu0 %v3847_v62 }
 0x39b   :  { %3543 = vmatprep.subr.bf16.mxu0 %v3848_v63 }
 0x39e   :  { %3544 = vmatpush3.bf16.msra.mxu0 %v3848_v63 }
 0x39f   :  { %3545 = vmatprep.subr.bf16.mxu0 %v3849_v1 }
 0x3a2   :  { %3546 = vmatpush3.bf16.msra.mxu0 %v3849_v1 }
 0x3a3   :  { %3547 = vmatprep.subr.bf16.mxu0 %v3850_v3 }
 0x3a6   :  { %3548 = vmatpush3.bf16.msra.mxu0 %v3850_v3 }
 0x3a7   :  { %3571 = vmatprep.subr.bf16.mxu0 %v3851_v4 }
 0x3a9   :  { %3550 = vmatmul.mubr.bf16.vlgmr.msra.gmra.mrb[28].mxu0 %v1812_v5  ;;  %v2932_v5 = vld [vmem:[%s4593_s8 + $0x4] sm:$0xf] }
 0x3aa   :  { %3572 = vmatpush3.bf16.msra.mxu0 %v3851_v4  ;;  %3587 = vmatprep.mubr.bf16.mxu0 %v1995_v58  ;;  %v2174_v4 = vld [vmem:[%s4593_s8] sm:$0xf] }
 0x3ab   :  { %3573 = vmatprep.subr.bf16.mxu0 %v3852_v7 }
 0x3ae   :  { %3574 = vmatpush3.bf16.msra.mxu0 %v3852_v7  ;;  %v3859_v7 = vld [vmem:[#allocation10 + $0x40] sm:$0xff]  }
 0x3af   :  { %3575 = vmatprep.subr.bf16.mxu0 %v3853_v16 }
 0x3b2   :  { %3576 = vmatpush3.bf16.msra.mxu0 %v3853_v16  ;;  %v3860_v16 = vld [vmem:[#allocation10 + $0x48] sm:$0xff]  }
 0x3b3   :  { %3577 = vmatprep.subr.bf16.mxu0 %v3854_v8 }
 0x3b6   :  { %3578 = vmatpush3.bf16.msra.mxu0 %v3854_v8  ;;  %v3861_v8 = vld [vmem:[#allocation10 + $0x50] sm:$0xff]  }
 0x3b7   :  { %3579 = vmatprep.subr.bf16.mxu0 %v3855_v18 }
 0x3ba   :  { %3580 = vmatpush3.bf16.msra.mxu0 %v3855_v18  ;;  %v3862_v18 = vld [vmem:[#allocation10 + $0x58] sm:$0xff]  }
 0x3bb   :  { %3581 = vmatprep.subr.bf16.mxu0 %v3856_v25 }
 0x3be   :  { %3582 = vmatpush3.bf16.msra.mxu0 %v3856_v25  ;;  %v3863_v25 = vld [vmem:[#allocation10 + $0x60] sm:$0xff]  }
 0x3bf   :  { %3583 = vmatprep.subr.bf16.mxu0 %v3857_v9 }
 0x3c2   :  { %3584 = vmatpush3.bf16.msra.mxu0 %v3857_v9  ;;  %v3864_v9 = vld [vmem:[#allocation10 + $0x68] sm:$0xff]  }
 0x3c3   :  { %3585 = vmatprep.subr.bf16.mxu0 %v3858_v29 }
 0x3c6   :  { %3586 = vmatpush3.bf16.msra.mxu0 %v3858_v29  ;;  %v3865_v29 = vld [vmem:[#allocation10 + $0x70] sm:$0xff]  }
 0x3c7   :  { %3683 = vmatprep.subr.bf16.mxu0 %v4042_v0 }
 0x3c9   :  { %3588 = vmatmul.mubr.bf16.vlgmr.msra.gmra.mrb[28].mxu0 %v1996_v10  ;;  %v3866_v10 = vld [vmem:[#allocation10 + $0x78] sm:$0xff]  }
 0x3ca   :  { %3699 = vmatprep.mubr.msk.bf16.mxu0 %vm4043_vm0, %v4042_v0 }
 0x49c   :  { %v3589_v35 = vpop.f32.mrb[28].mxu0 }
 0x49d   :  { %v2096_v11 = vpop.f32.mrb[29].mxu0  ;;  %v2127_v13 = vmul.f32 %v3589_v35, %v3589_v35  ;;  %v2116_v55 = vsel %vm326_vm2, %v3589_v35, 0.0 }
 0x49e   :  { %v3590_v39 = vpop.f32.mrb[30].mxu0  ;;  %v2125_v14 = vmul.f32 %v2096_v11, %v2096_v11 }
 0x49f   :  { %v2099_v45 = vpop.f32.mrb[31].mxu0  ;;  %v2129_v6 = vsel %vm326_vm2, %v2127_v13, 0.0 }
 0x4a0   :  { %v2115_v49 = vadd.f32 %v2099_v45, %v2096_v11  ;;  %v2126_v15 = vmul.f32 %v2099_v45, %v2099_v45 }
 0x4a2   :  { %v2117_v59 = vadd.f32 %v2116_v55, %v2115_v49  ;;  %v2128_v2 = vadd.f32 %v2126_v15, %v2125_v14  ;;  %v3867_v14 = vld [vmem:[#allocation10] sm:$0xff]  }
 0x4a4   :  { %v2118_v12 = vrot.slane %v2117_v59, 4  ;;  %v2130_v17 = vadd.f32 %v2129_v6, %v2128_v2  ;;  %v3868_v2 = vld [vmem:[#allocation10 + $0x8] sm:$0xff]   ;;  %v3869_v6 = vld [vmem:[#allocation10 + $0x10] sm:$0xff]  }
 0x4a6   :  { %v2119_v19 = vadd.f32 %v2118_v12, %v2117_v59  ;;  %v2131_v20 = vrot.slane %v2130_v17, 4  ;;  %v3870_v12 = vld [vmem:[#allocation10 + $0x18] sm:$0xff]  }
 0x4a8   :  { %v2120_v21 = vrot.slane %v2119_v19, 2  ;;  %v2132_v22 = vadd.f32 %v2131_v20, %v2130_v17  ;;  %v3871_v17 = vld [vmem:[#allocation10 + $0x20] sm:$0xff]   ;;  %v3873_v20 = vld [vmem:[#allocation10 + $0x30] sm:$0xff]  }
 0x4aa   :  { %v2121_v23 = vadd.f32 %v2120_v21, %v2119_v19  ;;  %v2133_v24 = vrot.slane %v2132_v22, 2  ;;  %v3872_v19 = vld [vmem:[#allocation10 + $0x28] sm:$0xff]   ;;  %v3874_v21 = vld [vmem:[#allocation10 + $0x38] sm:$0xff]  }
 0x4ac   :  { %v2122_v26 = vrot.slane %v2121_v23, 1  ;;  %v2134_v27 = vadd.f32 %v2133_v24, %v2132_v22  ;;  %v3875_v24 = vld [vmem:[#allocation10 + $0x80] sm:$0xff]  }
 0x4ae   :  { %v2123_v28 = vadd.f32 %v2122_v26, %v2121_v23  ;;  %v2135_v30 = vrot.slane %v2134_v27, 1  ;;  %v2950_v23 = vld [vmem:[%s4593_s8 + $0x8] sm:$0xf] }
 0x4af   :  { %v3876_v26 = vld [vmem:[#allocation10 + $0x88] sm:$0xff]  }
 0x4b0   :  { %v2124_v31 = vmul.f32 0.055555556, %v2123_v28  ;;  %v2136_v32 = vadd.f32 %v2135_v30, %v2134_v27  ;;  %v3877_v27 = vld [vmem:[#allocation10 + $0x90] sm:$0xff]   ;;  %v3878_v28 = vld [vmem:[#allocation10 + $0x98] sm:$0xff]   ;;  %v3879_v30 = vld [vmem:[#allocation10 + $0xa0] sm:$0xff]  }
 0x4b2   :  { %v2137_v33 = vmul.f32 0.055555556, %v2136_v32  ;;  %v2138_v34 = vmul.f32 %v2124_v31, %v2124_v31  ;;  %v3881_v32 = vld [vmem:[#allocation10 + $0xb0] sm:$0xff]  }
 0x4b4   :  { %v2139_v36 = vsub.f32 %v2137_v33, %v2138_v34  ;;  %v3882_v33 = vld [vmem:[#allocation10 + $0xb8] sm:$0xff]   ;;  %v3883_v34 = vld [vmem:[#allocation10 + $0xc0] sm:$0xff]  }
 0x4b5   :  { %3684 = vmatpush3.bf16.msra.mxu0 %v3883_v34 }
 0x4b6   :  { %v2140_v37 = vadd.f32 1e-05, %v2139_v36  ;;  %v3884_v36 = vld [vmem:[#allocation10 + $0xc8] sm:$0xff]   ;;  %3685 = vmatprep.subr.bf16.mxu0 %v4042_v0 }
 0x4b8   :  { %3893 = vrsqrt.f32 %v2140_v37  ;;  %v3885_v37 = vld [vmem:[#allocation10 + $0xd0] sm:$0xff]  }
 0x4b9   :  { %3686 = vmatpush3.bf16.msra.mxu0 %v3884_v36 }
 0x4ba   :  { %3687 = vmatprep.subr.bf16.mxu0 %v4042_v0 }
 0x4bd   :  { %3688 = vmatpush3.bf16.msra.mxu0 %v3885_v37 }
 0x4be   :  { %3689 = vmatprep.subr.bf16.mxu0 %v4042_v0 }
 0x4c2   :  { %v3894_v40 = vpop.eup %3893 }
 0x4c3   :  { %v2142_v41 = vmul.f32 %v3894_v40, %v2113_v38  ;;  %v3886_v38 = vld [vmem:[#allocation10 + $0xd8] sm:$0xff]   ;;  %v3887_v40 = vld [vmem:[#allocation10 + $0xe0] sm:$0xff]  }
 0x4c4   :  { %3690 = vmatpush3.bf16.msra.mxu0 %v3886_v38 }
 0x4c5   :  { %v2143_v43 = vmul.f32 %v2142_v41, %v2124_v31  ;;  %v2149_v44 = vrot.slane %v2142_v41, %v4272_v48  ;;  %v3880_v31 = vld [vmem:[#allocation10 + $0xa8] sm:$0xff]   ;;  %3691 = vmatprep.subr.bf16.mxu0 %v4042_v0 }
 0x4c7   :  { %v2144_v46 = vsub.f32 %v2114_v42, %v2143_v43  ;;  %v2151_v47 = vmul.f32 %v2149_v44, %v2096_v11  ;;  %v2152_v50 = vmul.f32 %v2149_v44, %v2099_v45  ;;  %v2153_v51 = vmul.f32 %v3589_v35, %v2149_v44 }
 0x4c8   :  { %3692 = vmatpush3.bf16.msra.mxu0 %v3887_v40 }
 0x4c9   :  { %v2158_v52 = vrot.slane %v2144_v46, %v4272_v48  ;;  %3693 = vmatprep.subr.bf16.mxu0 %v4042_v0 }
 0x4cb   :  { %v2161_v53 = vadd.f32 %v2158_v52, %v2152_v50  ;;  %v2160_v54 = vadd.f32 %v2158_v52, %v2151_v47  ;;  %v2162_v56 = vadd.f32 %v2158_v52, %v2153_v51 }
 0x4cd   :  { %vm2164_vm1 = vcmp.ge.f32.partialorder %v2161_v53, 0.0  ;;  %v2167_v57 = vmul.f32 0.2, %v2161_v53  ;;  %vm2163_vm2 = vcmp.ge.f32.partialorder %v2160_v54, 0.0  ;;  %v2166_v58 = vmul.f32 0.2, %v2160_v54 }
 0x4ce   :  { %vm2165_vm4 = vcmp.ge.f32.partialorder %v2162_v56, 0.0  ;;  %v2168_v60 = vmul.f32 0.2, %v2162_v56 }
 0x4cf   :  { %v2169_v61 = vsel %vm2163_vm2, %v2160_v54, %v2166_v58  ;;  %v2170_v62 = vsel %vm2164_vm1, %v2161_v53, %v2167_v57 }
 0x4d0   :  { %v4491_v63 = vpack.c.bf16 %v2170_v62, %v2169_v61  ;;  %v2171_v1 = vsel %vm2165_vm4, %v2162_v56, %v2168_v60  ;;  %v2960_v60 = vld [vmem:[%s4593_s8 + $0xc] sm:$0xf]  ;;  %v3889_v62 = vld [vmem:[#allocation10 + $0xf0] sm:$0xff]  }
 0x4d1   :  { %v2173_v3 = vpack.c.bf16 %v2171_v1, %v2171_v1  ;;  %v3888_v61 = vld [vmem:[#allocation10 + $0xe8] sm:$0xff]  }
 0x4d2   :  { %3592 = vmatpush3.bf16.msra.mxu1 %v4491_v63  ;;  %3694 = vmatpush3.bf16.msra.mxu0 %v3888_v61 }
 0x4d3   :  { %3593 = vmatprep.subr.bf16.mxu1 %v4042_v0  ;;  %v4496_v48 = vsel %vm478_vm3, %v2173_v3, 0  ;;  %3695 = vmatprep.subr.bf16.mxu0 %v4042_v0 }
 0x4d6   :  { %3594 = vmatpush3.bf16.msra.mxu1 %v4496_v48  ;;  %3696 = vmatpush3.bf16.msra.mxu0 %v3889_v62 }
 0x4d7   :  { %3599 = vmatprep.subr.bf16.mxu1 %v4042_v0  ;;  %3697 = vmatprep.subr.bf16.mxu0 %v4042_v0 }
 0x4d9   :  { %3596 = vmatmul.mubr.msk.bf16.vlgmr.msra.gmra.mrb[36].mxu1 %vm2175_vm5, %v2174_v4 }
 0x4da   :  { %3600 = vmatpush3.bf16.msra.mxu1 %v4491_v63  ;;  %3603 = vmatprep.mubr.msk.bf16.mxu1 %vm4043_vm0, %v4042_v0 }
 0x4db   :  { %3601 = vmatprep.subr.bf16.mxu1 %v4042_v0 }
 0x4de   :  { %3602 = vmatpush3.bf16.msra.mxu1 %v4496_v48 }
 0x4df   :  { %3607 = vmatprep.subr.bf16.mxu1 %v4042_v0 }
 0x4e1   :  { %3604 = vmatmul.mubr.msk.bf16.vlgmr.msra.gmra.mrb[40].mxu1 %vm2175_vm5, %v2932_v5 }
 0x4e2   :  { %3608 = vmatpush3.bf16.msra.mxu1 %v3859_v7  ;;  %3623 = vmatprep.mubr.msk.bf16.mxu1 %vm4043_vm0, %v4042_v0 }
 0x4e3   :  { %3609 = vmatprep.subr.bf16.mxu1 %v4042_v0 }
 0x4e6   :  { %3610 = vmatpush3.bf16.msra.mxu1 %v3860_v16 }
 0x4e7   :  { %3611 = vmatprep.subr.bf16.mxu1 %v4042_v0 }
 0x4ea   :  { %3612 = vmatpush3.bf16.msra.mxu1 %v3861_v8 }
 0x4eb   :  { %3613 = vmatprep.subr.bf16.mxu1 %v4042_v0 }
 0x4ee   :  { %3614 = vmatpush3.bf16.msra.mxu1 %v3862_v18 }
 0x4ef   :  { %3615 = vmatprep.subr.bf16.mxu1 %v4042_v0 }
 0x4f2   :  { %3616 = vmatpush3.bf16.msra.mxu1 %v3863_v25 }
 0x4f3   :  { %3617 = vmatprep.subr.bf16.mxu1 %v4042_v0 }
 0x4f6   :  { %3618 = vmatpush3.bf16.msra.mxu1 %v3864_v9 }
 0x4f7   :  { %3619 = vmatprep.subr.bf16.mxu1 %v4042_v0 }
 0x4fa   :  { %3620 = vmatpush3.bf16.msra.mxu1 %v3865_v29  ;;  %v2970_v29 = vld [vmem:[%s4595_s10] ss:$0 sm:$0xff] }
 0x4fb   :  { %3621 = vmatprep.subr.bf16.mxu1 %v4042_v0 }
 0x4fe   :  { %3622 = vmatpush3.bf16.msra.mxu1 %v3866_v10 }
 0x4ff   :  { %3627 = vmatprep.subr.bf16.mxu1 %v4042_v0 }
 0x5ac   :  { %v2216_v35 = vpop.f32.mrb[36].mxu1 }
 0x5ad   :  { %v3597_v11 = vpop.f32.mrb[37].mxu1  ;;  %v2222_v22 = vpack.c.bf16 %v2216_v35, %v2216_v35 }
 0x5ae   :  { %v2219_v39 = vpop.f32.mrb[38].mxu1 }
 0x5af   :  { %v3598_v13 = vpop.f32.mrb[39].mxu1 }
 0x5b4   :  { %v2278_v45 = vpop.f32.mrb[40].mxu1 }
 0x5b5   :  { %v2284_v49 = vpack.c.bf16 %v2278_v45, %v2278_v45  ;;  %v3605_v15 = vpop.f32.mrb[41].mxu1 }
 0x5b6   :  { %v2281_v55 = vpop.f32.mrb[42].mxu1 }
 0x5b7   :  { %v3606_v59 = vpop.f32.mrb[43].mxu1  ;;  %3624 = vmatmul.mubr.bf16.vlgmr.msra.gmra.mrb[44].mxu1 %v2284_v49 }
 0x5b8   :  { %3628 = vmatpush3.bf16.msra.mxu1 %v3867_v14  ;;  %3643 = vmatprep.mubr.msk.bf16.mxu1 %vm4043_vm0, %v4042_v0 }
 0x5b9   :  { %3629 = vmatprep.subr.bf16.mxu1 %v4042_v0 }
 0x5bc   :  { %3630 = vmatpush3.bf16.msra.mxu1 %v3868_v2 }
 0x5bd   :  { %3631 = vmatprep.subr.bf16.mxu1 %v4042_v0 }
 0x5c0   :  { %3632 = vmatpush3.bf16.msra.mxu1 %v3869_v6 }
 0x5c1   :  { %3633 = vmatprep.subr.bf16.mxu1 %v4042_v0 }
 0x5c4   :  { %3634 = vmatpush3.bf16.msra.mxu1 %v3870_v12 }
 0x5c5   :  { %3635 = vmatprep.subr.bf16.mxu1 %v4042_v0 }
 0x5c8   :  { %3636 = vmatpush3.bf16.msra.mxu1 %v3871_v17 }
 0x5c9   :  { %3637 = vmatprep.subr.bf16.mxu1 %v4042_v0 }
 0x5cc   :  { %3638 = vmatpush3.bf16.msra.mxu1 %v3872_v19 }
 0x5cd   :  { %3639 = vmatprep.subr.bf16.mxu1 %v4042_v0 }
 0x5d0   :  { %3640 = vmatpush3.bf16.msra.mxu1 %v3873_v20 }
 0x5d1   :  { %3641 = vmatprep.subr.bf16.mxu1 %v4042_v0 }
 0x5d4   :  { %3642 = vmatpush3.bf16.msra.mxu1 %v3874_v21 }
 0x5d5   :  { %3647 = vmatprep.subr.bf16.mxu1 %v4042_v0 }
 0x5d7   :  { %3644 = vmatmul.mubr.bf16.vlgmr.msra.gmra.mrb[48].mxu1 %v2222_v22 }
 0x5d8   :  { %3648 = vmatpush3.bf16.msra.mxu1 %v4491_v63  ;;  %3651 = vmatprep.mubr.msk.bf16.mxu1 %vm4043_vm0, %v4042_v0 }
 0x5d9   :  { %3649 = vmatprep.subr.bf16.mxu1 %v4042_v0 }
 0x5dc   :  { %3650 = vmatpush3.bf16.msra.mxu1 %v4496_v48 }
 0x5dd   :  { %3655 = vmatprep.subr.bf16.mxu1 %v4042_v0 }
 0x5df   :  { %3652 = vmatmul.mubr.msk.bf16.vlgmr.msra.gmra.mrb[52].mxu1 %vm2175_vm5, %v2950_v23 }
 0x5e0   :  { %3671 = vmatprep.mubr.msk.bf16.mxu1 %vm4043_vm0, %v4042_v0  ;;  %3656 = vmatpush3.bf16.msra.mxu1 %v3875_v24 }
 0x5e1   :  { %3657 = vmatprep.subr.bf16.mxu1 %v4042_v0 }
 0x5e4   :  { %3658 = vmatpush3.bf16.msra.mxu1 %v3876_v26 }
 0x5e5   :  { %3659 = vmatprep.subr.bf16.mxu1 %v4042_v0 }
 0x5e8   :  { %3660 = vmatpush3.bf16.msra.mxu1 %v3877_v27 }
 0x5e9   :  { %3661 = vmatprep.subr.bf16.mxu1 %v4042_v0 }
 0x5ec   :  { %3662 = vmatpush3.bf16.msra.mxu1 %v3878_v28 }
 0x5ed   :  { %3663 = vmatprep.subr.bf16.mxu1 %v4042_v0 }
 0x5f0   :  { %3664 = vmatpush3.bf16.msra.mxu1 %v3879_v30 }
 0x5f1   :  { %3665 = vmatprep.subr.bf16.mxu1 %v4042_v0 }
 0x5f4   :  { %3666 = vmatpush3.bf16.msra.mxu1 %v3880_v31 }
 0x5f5   :  { %3667 = vmatprep.subr.bf16.mxu1 %v4042_v0 }
 0x5f8   :  { %3668 = vmatpush3.bf16.msra.mxu1 %v3881_v32 }
 0x5f9   :  { %3669 = vmatprep.subr.bf16.mxu1 %v4042_v0 }
 0x5fc   :  { %3670 = vmatpush3.bf16.msra.mxu1 %v3882_v33 }
 0x5fd   :  { %3675 = vmatprep.subr.bf16.mxu1 %v4042_v0 }
 0x68a   :  { %v2384_v41 = vpop.f32.mrb[44].mxu1 }
 0x68b   :  { %v3625_v42 = vpop.f32.mrb[45].mxu1 }
 0x68c   :  { %v2387_v43 = vpop.f32.mrb[46].mxu1 }
 0x68d   :  { %v3626_v44 = vpop.f32.mrb[47].mxu1 }
 0x6aa   :  { %v2472_v46 = vpop.f32.mrb[48].mxu1 }
 0x6ab   :  { %v2473_v47 = vadd.f32 %v2472_v46, %v2384_v41  ;;  %v3645_v50 = vpop.f32.mrb[49].mxu1 }
 0x6ac   :  { %v2475_v51 = vpop.f32.mrb[50].mxu1 }
 0x6ad   :  { %v3646_v52 = vpop.f32.mrb[51].mxu1 }
 0x6b2   :  { %v2517_v53 = vpop.f32.mrb[52].mxu1 }
 0x6b3   :  { %v2523_v54 = vpack.c.bf16 %v2517_v53, %v2517_v53  ;;  %v3653_v56 = vpop.f32.mrb[53].mxu1 }
 0x6b4   :  { %v2520_v57 = vpop.f32.mrb[54].mxu1 }
 0x6b5   :  { %v3654_v58 = vpop.f32.mrb[55].mxu1  ;;  %3672 = vmatmul.mubr.bf16.vlgmr.msra.gmra.mrb[56].mxu1 %v2523_v54 }
 0x6b6   :  { %3676 = vmatpush3.bf16.msra.mxu1 %v4491_v63  ;;  %3679 = vmatprep.mubr.msk.bf16.mxu1 %vm4043_vm0, %v4042_v0  ;;  %v3890_v63 = vld [vmem:[#allocation10 + $0xf8] sm:$0xff]  }
 0x6b7   :  { %3677 = vmatprep.subr.bf16.mxu1 %v4042_v0  ;;  %3698 = vmatpush3.bf16.msra.mxu0 %v3890_v63 }
 0x6ba   :  { %3678 = vmatpush3.bf16.msra.mxu1 %v4496_v48 }
 0x6bd   :  { %3680 = vmatmul.mubr.msk.bf16.vlgmr.msra.gmra.mrb[60].mxu1 %vm2175_vm5, %v2960_v60 }
 0x788   :  { %v2623_v1 = vpop.f32.mrb[56].mxu1 }
 0x789   :  { %v2629_v3 = vadd.f32 %v2623_v1, %v2473_v47  ;;  %v3673_v4 = vpop.f32.mrb[57].mxu1 }
 0x78a   :  { %v2626_v48 = vpop.f32.mrb[58].mxu1 }
 0x78b   :  { %v3674_v5 = vpop.f32.mrb[59].mxu1 }
 0x790   :  { %v2669_v7 = vpop.f32.mrb[60].mxu1 }
 0x791   :  { %v2675_v16 = vpack.c.bf16 %v2669_v7, %v2669_v7  ;;  %v3681_v8 = vpop.f32.mrb[61].mxu1 }
 0x792   :  { %v2672_v18 = vpop.f32.mrb[62].mxu1 }
 0x793   :  { %v3682_v25 = vpop.f32.mrb[63].mxu1  ;;  %3700 = vmatmul.mubr.bf16.vlgmr.msra.gmra.mrb[32].mxu0 %v2675_v16 }
 0x866   :  { %v2775_v9 = vpop.f32.mrb[32].mxu0 }
 0x867   :  { %v2781_v0 = vadd.f32 %v2775_v9, %v2629_v3  ;;  %v3701_v10 = vpop.f32.mrb[33].mxu0 }
 0x868   :  { %v2778_v35 = vpop.f32.mrb[34].mxu0 }
 0x869   :  { %v2789_v11 = vadd.f32 %v2970_v29, %v2781_v0  ;;  %v3702_v39 = vpop.f32.mrb[35].mxu0 }
 0x86b   :  { %2790 = vst [vmem:[#allocation11] sm:$0xff] %v2789_v11 }
 0x86c   :  { %4016 = shalt.err (!%p4013_p2)
}
 0x86d   :  { %s4017_s10 = scalar_lea.hbm %s4596_s11, 128 }
 0x86e   :  { %p4018_p3 = scmp.ne.s32.totalorder %s4596_s11, %s4017_s10  ;;  %p4021_p4 = scmp.lt.u32.totalorder %s4017_s10, %s4596_s11 }
 0x870   :  { %p4023_p5 = pnand %p4021_p4, %p4018_p3 }
 0x872   :  { %4026 = shalt.err (!%p4023_p5)
}
 0x873   :  { %2800 = dma.vmem_to_hbm [thread:$0]  %s2798_s14, 128, %s4596_s11, [#allocation4]  }
 0x874   :  { %4033 = dma.done.wait [#allocation4], 128  }
 0x875   :  { %4034 = vsyncadd [#allocation4], 4294967168 }
 0x876   :  { %2804 = vsyncpa [#allocation3], 1 }
 0x877   :  { %2805 = vsyncpa [#allocation6], 1 }
 0x878   :  { %2806 = vsyncpa [#allocation9], 1 }
 0x879   :  { %2807 = vsyncpa [#allocation4], 1 }

</bundles_post_ra>
